<compile_context>
chip_gen: v7x
topology: tpu7x:2x2x1
jax: 0.10.0
libtpu: 0.0.40
codegen_flags: <defaults>
</compile_context>

<pallas_src>
import functools

import jax
import jax.numpy as jnp
from jax import lax
from jax.experimental import pallas as pl
from jax.experimental.pallas import tpu as pltpu

LANE = 128  # TPU lane width; all feature dims are zero-padded to this.


def _round_up(n, m):
    return ((n + m - 1) // m) * m


def _pad_axis(x, axis, size):
    pad = size - x.shape[axis]
    if pad <= 0:
        return x
    widths = [(0, 0)] * x.ndim
    widths[axis] = (0, pad)
    return jnp.pad(x, widths)


def _vmem_limit_bytes():
    """~half the physical VMEM of the current chip (v7x: 32 MiB, v5e/v6e: 64 MiB)."""
    cap = None
    try:
        cap = getattr(pltpu.get_tpu_info(), "vmem_capacity_bytes", None)
    except Exception:
        cap = None
    if not cap:
        cap = 64 * 1024 * 1024  # conservative: v7x physical VMEM
    return int(min(cap // 2, 96 * 1024 * 1024))


def _choose_f_blk(F, b_blk, *, frame_width=LANE, target_tile_bytes=1 << 20):
    """Frame-tile depth so one streamed f32 block is ~1 MiB (multiple of 8 sublanes)."""
    rows_target = max(8, target_tile_bytes // (frame_width * 4 * b_blk))
    f_blk = max(8, (rows_target // 8) * 8)
    return min(f_blk, _round_up(F, 8))


# --------------------------------- fused kernel ---------------------------------------


def _clap_audio_kernel(frames_ref, mel_ref,
                       w1_ref, b1_ref, w2_ref, b2_ref,
                       wp1_ref, bp1_ref, wp2_ref, bp2_ref,
                       x_ref, feat_ref,
                       acc_ref, *, inv_total_frames):
    fi = pl.program_id(1)

    @pl.when(fi == 0)
    def _init():
        acc_ref[...] = jnp.zeros_like(acc_ref)

    # ---- streamed part (every grid step; frame DMA double-buffered by BlockSpec) ----
    b_blk, f_blk, w = frames_ref.shape
    m_pad = mel_ref.shape[1]
    # Frames arrive as f32 straight from HBM; the bf16 MXU cast happens here on the VPU
    # (which has slack) instead of as a separate wrapper-side XLA pass.
    frames2d = frames_ref[...].reshape(b_blk * f_blk, w).astype(jnp.bfloat16)
    # Hann window is already folded into mel_ref, so this is the only touch of frames.
    mel = jnp.dot(frames2d, mel_ref[...],
                  preferred_element_type=jnp.float32)              # (b*f, M_pad) f32
    logmel = jnp.log1p(mel * mel)                                  # power + log, f32
    # Per-batch temporal pooling as an XLU sublane reduction (keeps f32, keeps the MXU
    # free for the filterbank, no pool-matrix input); accumulated over frame steps.
    acc_ref[...] += jnp.sum(logmel.reshape(b_blk, f_blk, m_pad), axis=1)

    # ---- tiny encoder-MLP / projection / normalize tail: last frame step only ----
    @pl.when(fi == pl.num_programs(1) - 1)
    def _finalize():
        pooled = acc_ref[...] * inv_total_frames                   # temporal mean, f32

        # TODO(synk): PyTorch nn.GELU defaults to exact erf; tanh-approximate gelu is
        # used because Mosaic has no reliable erf lowering.
        h = jnp.dot(pooled.astype(jnp.bfloat16), w1_ref[...],
                    preferred_element_type=jnp.float32) + b1_ref[...]
        h = jax.nn.gelu(h)
        h = jnp.dot(h.astype(jnp.bfloat16), w2_ref[...],
                    preferred_element_type=jnp.float32) + b2_ref[...]
        feat_ref[...] = h                                          # pooled hidden state

        p = jnp.dot(h.astype(jnp.bfloat16), wp1_ref[...],
                    preferred_element_type=jnp.float32) + bp1_ref[...]
        p = jax.nn.gelu(p)
        p = jnp.dot(p.astype(jnp.bfloat16), wp2_ref[...],
                    preferred_element_type=jnp.float32) + bp2_ref[...]

        # F.normalize(p, dim=-1): padded columns are exactly zero so the padded norm
        # equals the logical norm; rsqrt runs on the (otherwise idle) EUP slot.
        sumsq = jnp.sum(p * p, axis=-1, keepdims=True)
        x_ref[...] = p * lax.rsqrt(jnp.maximum(sumsq, 1e-24))


# --------------------------------- params / wrapper ------------------------------------


def init_params(key, frame_len=128, n_mels=64, hidden=64, proj=32):
    ks = jax.random.split(key, 5)
    scale = lambda fan_in: 1.0 / jnp.sqrt(jnp.float32(fan_in))
    n = jnp.arange(frame_len, dtype=jnp.float32)
    hann = 0.5 - 0.5 * jnp.cos(2.0 * jnp.pi * n / frame_len)
    return {
        'window': hann.reshape(1, frame_len),
        'mel': jax.random.normal(ks[0], (frame_len, n_mels), jnp.float32) * scale(frame_len),
        'w1':  jax.random.normal(ks[1], (n_mels, hidden), jnp.float32) * scale(n_mels),
        'b1':  jnp.zeros((1, hidden), jnp.float32),
        'w2':  jax.random.normal(ks[2], (hidden, hidden), jnp.float32) * scale(hidden),
        'b2':  jnp.zeros((1, hidden), jnp.float32),
        'wp1': jax.random.normal(ks[3], (hidden, proj), jnp.float32) * scale(hidden),
        'bp1': jnp.zeros((1, proj), jnp.float32),
        'wp2': jax.random.normal(ks[4], (proj, proj), jnp.float32) * scale(proj),
        'bp2': jnp.zeros((1, proj), jnp.float32),
    }


def _prepare_kernel_params(params):
    """Fold the Hann window into the filterbank, pad feature dims to 128 lanes, and cast
    matmul operands to bf16 (f32 accumulation happens inside the kernel)."""
    mel_w = params['window'].reshape(-1, 1) * params['mel']        # diag(win) @ mel, exact

    def pad2(w):
        return _pad_axis(_pad_axis(w, 0, LANE), 1, LANE)

    return {
        'mel_w': _pad_axis(mel_w, 1, LANE).astype(jnp.bfloat16),   # (W, 128)
        'w1':  pad2(params['w1']).astype(jnp.bfloat16),
        'w2':  pad2(params['w2']).astype(jnp.bfloat16),
        'wp1': pad2(params['wp1']).astype(jnp.bfloat16),
        'wp2': pad2(params['wp2']).astype(jnp.bfloat16),
        # biases stay f32 (added post-matmul in f32)
        'b1':  _pad_axis(params['b1'], 1, LANE),
        'b2':  _pad_axis(params['b2'], 1, LANE),
        'bp1': _pad_axis(params['bp1'], 1, LANE),
        'bp2': _pad_axis(params['bp2'], 1, LANE),
    }


def model_wrapper_forward(audio, params, *, has_features=True, b_blk=8, f_blk=None):
    """Pallas analogue of ModelWrapper.forward: returns (x, features)."""
    B, _, T = audio.shape
    W, _ = params['mel'].shape
    H = params['w1'].shape[1]
    P = params['wp2'].shape[1]

    wave = audio[:, 0, :]                                   # channel select, like `a[0]`
    F = T // W
    # Frames stay f32 in HBM (no separate cast pass); kernel casts to bf16 on the VPU.
    frames = wave[:, :F * W].reshape(B, F, W)

    b_blk = max(8, (b_blk // 8) * 8)                        # sublane-aligned batch tile
    B_pad = _round_up(B, b_blk)
    if f_blk is None:
        f_blk = _choose_f_blk(F, b_blk, frame_width=W)      # ~1 MiB streamed tile/step
    F_pad = _round_up(F, f_blk)
    # Zero-padded frames/batches contribute exactly 0 to the pooled sum (log1p(0)=0),
    # so inv_total_frames uses the true F and padded batch rows are sliced away below.
    frames = _pad_axis(_pad_axis(frames, 0, B_pad), 1, F_pad)

    grid = (B_pad // b_blk, F_pad // f_blk)

    kp = _prepare_kernel_params(params)

    frame_spec = pl.BlockSpec((b_blk, f_blk, W), lambda bi, fi: (bi, fi, 0))

    def resident(arr):   # small weights: one block == full array, stays resident in VMEM
        return pl.BlockSpec(arr.shape, lambda bi, fi, _nd=arr.ndim: (0,) * _nd)

    inputs = (frames, kp['mel_w'], kp['w1'], kp['b1'], kp['w2'], kp['b2'],
              kp['wp1'], kp['bp1'], kp['wp2'], kp['bp2'])

    out_shape = (jax.ShapeDtypeStruct((B_pad, LANE), jnp.float32),   # x   (lane-padded)
                 jax.ShapeDtypeStruct((B_pad, LANE), jnp.float32))   # features (padded)
    out_specs = [pl.BlockSpec((b_blk, LANE), lambda bi, fi: (bi, 0)),
                 pl.BlockSpec((b_blk, LANE), lambda bi, fi: (bi, 0))]

    flops = (2 * B_pad * F_pad * W * LANE            # filterbank matmul
             + 4 * 2 * B_pad * LANE * LANE)          # encoder MLP + projection tail
    transcendentals = B_pad * F_pad * LANE + 2 * B_pad * LANE + B_pad
    bytes_accessed = (int(frames.size) * 4
                      + sum(int(a.size) * a.dtype.itemsize for a in inputs[1:])
                      + 2 * B_pad * LANE * 4)

    kernel = functools.partial(_clap_audio_kernel, inv_total_frames=1.0 / F)

    x_pad, feat_pad = pl.pallas_call(
        kernel,
        out_shape=out_shape,
        grid_spec=pltpu.PrefetchScalarGridSpec(
            num_scalar_prefetch=0,
            grid=grid,
            in_specs=[frame_spec] + [resident(a) for a in inputs[1:]],
            out_specs=out_specs,
            scratch_shapes=[pltpu.VMEM((b_blk, LANE), jnp.float32)]),
        compiler_params=pltpu.CompilerParams(
            # batch axis sharded across TensorCores (v7x megacore); F is the reduction.
            dimension_semantics=("parallel", "arbitrary"),
            vmem_limit_bytes=_vmem_limit_bytes()),
        cost_estimate=pl.CostEstimate(flops=flops,
                                      transcendentals=transcendentals,
                                      bytes_accessed=bytes_accessed),
    )(*inputs)

    x = x_pad[:B, :P]
    features = feat_pad[:B, :H] if has_features else None
    return x, features


# --------------------------------- pure-JAX reference ----------------------------------


def _reference_forward(audio, params):
    """Mirrors the kernel arithmetic (bf16 matmul operands, f32 accumulation) in plain JAX."""
    B, _, T = audio.shape
    W, _ = params['mel'].shape
    H = params['w1'].shape[1]
    P = params['wp2'].shape[1]
    F = T // W

    wave = audio[:, 0, :]
    frames = wave[:, :F * W].reshape(B, F, W).astype(jnp.bfloat16).astype(jnp.float32)
    kp = jax.tree_util.tree_map(lambda a: a.astype(jnp.float32),
                                _prepare_kernel_params(params))

    mel = jnp.einsum('bfw,wm->bfm', frames, kp['mel_w'])
    logmel = jnp.log1p(mel * mel)
    pooled = jnp.mean(logmel, axis=1)

    def mm(a, w, b):
        return jnp.dot(a.astype(jnp.bfloat16).astype(jnp.float32), w) + b

    h = jax.nn.gelu(mm(pooled, kp['w1'], kp['b1']))
    h = mm(h, kp['w2'], kp['b2'])
    p = jax.nn.gelu(mm(h, kp['wp1'], kp['bp1']))
    p = mm(p, kp['wp2'], kp['bp2'])
    x = p / jnp.maximum(jnp.linalg.norm(p, axis=-1, keepdims=True), 1e-12)
    return x[:, :P], h[:, :H]


if __name__ == "__main__":
    key = jax.random.PRNGKey(0)
    pkey, xkey = jax.random.split(key)
    params = init_params(pkey)

    B, C, T = 2, 1, 4096        # -> F = 32 frames of W = 128
    audio = jax.random.normal(xkey, (B, C, T), jnp.float32)

    x, features = model_wrapper_forward(audio, params, has_features=True)
    jax.block_until_ready((x, features))

    assert x.shape == (B, 32), x.shape
    assert features.shape == (B, 64), features.shape
    assert x.dtype == jnp.float32 and features.dtype == jnp.float32

    norms = jnp.linalg.norm(x, axis=-1)
    assert bool(jnp.all(jnp.abs(norms - 1.0) < 1e-3)), norms

    x_ref, feat_ref = _reference_forward(audio, params)
    assert bool(jnp.max(jnp.abs(x - x_ref)) < 1e-2)
    assert bool(jnp.max(jnp.abs(features - feat_ref)) < 1e-2)

    # has_features=False path of ModelWrapper
    x_only, none_feat = model_wrapper_forward(audio, params, has_features=False)
    jax.block_until_ready(x_only)
    assert none_feat is None and x_only.shape == (B, 32)

    print("KERNEL_OK")
</pallas_src>

<mosaic_0001>
module attributes {stable_mosaic.version = 11 : i64} {
  func.func @_clap_audio_kernel(%arg0: i32, %arg1: i32, %arg2: memref<8x32x128xf32, #tpu.memory_space<vmem>>, %arg3: memref<128x128xbf16, #tpu.memory_space<vmem>>, %arg4: memref<128x128xbf16, #tpu.memory_space<vmem>>, %arg5: memref<1x128xf32, #tpu.memory_space<vmem>>, %arg6: memref<128x128xbf16, #tpu.memory_space<vmem>>, %arg7: memref<1x128xf32, #tpu.memory_space<vmem>>, %arg8: memref<128x128xbf16, #tpu.memory_space<vmem>>, %arg9: memref<1x128xf32, #tpu.memory_space<vmem>>, %arg10: memref<128x128xbf16, #tpu.memory_space<vmem>>, %arg11: memref<1x128xf32, #tpu.memory_space<vmem>>, %arg12: memref<8x128xf32, #tpu.memory_space<vmem>>, %arg13: memref<8x128xf32, #tpu.memory_space<vmem>>, %arg14: memref<8x128xf32, #tpu.memory_space<vmem>>) attributes {dimension_semantics = [#tpu.dimension_semantics<parallel>, #tpu.dimension_semantics<arbitrary>], iteration_bounds = array<i64: 1, 1>, scalar_prefetch = 0 : i64, scratch_operands = 1 : i64, tpu.core_type = #tpu.core_type<tc>, window_params = [{transform_indices = @transform_0, window_bounds = array<i64: 8, 32, 128>}, {pipeline_mode = #tpu.pipeline_mode<synchronous>, transform_indices = @transform_1, window_bounds = array<i64: 128, 128>}, {pipeline_mode = #tpu.pipeline_mode<synchronous>, transform_indices = @transform_2, window_bounds = array<i64: 128, 128>}, {pipeline_mode = #tpu.pipeline_mode<synchronous>, transform_indices = @transform_3, window_bounds = array<i64: 1, 128>}, {pipeline_mode = #tpu.pipeline_mode<synchronous>, transform_indices = @transform_4, window_bounds = array<i64: 128, 128>}, {pipeline_mode = #tpu.pipeline_mode<synchronous>, transform_indices = @transform_5, window_bounds = array<i64: 1, 128>}, {pipeline_mode = #tpu.pipeline_mode<synchronous>, transform_indices = @transform_6, window_bounds = array<i64: 128, 128>}, {pipeline_mode = #tpu.pipeline_mode<synchronous>, transform_indices = @transform_7, window_bounds = array<i64: 1, 128>}, {pipeline_mode = #tpu.pipeline_mode<synchronous>, transform_indices = @transform_8, window_bounds = array<i64: 128, 128>}, {pipeline_mode = #tpu.pipeline_mode<synchronous>, transform_indices = @transform_9, window_bounds = array<i64: 1, 128>}, {transform_indices = @transform_10, window_bounds = array<i64: 8, 128>}, {transform_indices = @transform_11, window_bounds = array<i64: 8, 128>}]} {
    %c0_i32 = arith.constant 0 : i32
    %0 = arith.cmpi eq, %arg1, %c0_i32 : i32
    %1 = arith.extui %0 : i1 to i32
    %c0_i32_0 = arith.constant 0 : i32
    %2 = arith.cmpi ne, %1, %c0_i32_0 : i32
    scf.if %2 {
      %cst_12 = arith.constant 0.000000e+00 : f32
      %18 = vector.broadcast %cst_12 : f32 to vector<8x128xf32>
      %c0_13 = arith.constant 0 : index
      %c0_14 = arith.constant 0 : index
      %19 = vector.load %arg14[%c0_13, %c0_14] : memref<8x128xf32, #tpu.memory_space<vmem>>, vector<8x128xf32>
      tpu.vector_store %arg14[%c0_13, %c0_14], %18 {strides = array<i32>} : memref<8x128xf32, #tpu.memory_space<vmem>>, vector<8x128xf32>,
    } else {
    }
    %c0 = arith.constant 0 : index
    %c0_1 = arith.constant 0 : index
    %c0_2 = arith.constant 0 : index
    %3 = vector.load %arg2[%c0, %c0_1, %c0_2] : memref<8x32x128xf32, #tpu.memory_space<vmem>>, vector<8x32x128xf32>
    %4 = vector.shape_cast %3 : vector<8x32x128xf32> to vector<256x128xf32>
    %5 = arith.truncf %4 : vector<256x128xf32> to vector<256x128xbf16>
    %c0_3 = arith.constant 0 : index
    %c0_4 = arith.constant 0 : index
    %6 = vector.load %arg3[%c0_3, %c0_4] : memref<128x128xbf16, #tpu.memory_space<vmem>>, vector<128x128xbf16>
    %cst = arith.constant dense<0.000000e+00> : vector<256x128xf32>
    %7 = tpu.matmul %5, %6, %cst {dimension_numbers = #tpu.dot_dimension_numbers<[1], [0], [0], [1], [0, 0, 1, 1], [], []>} : vector<256x128xbf16>, vector<128x128xbf16>, vector<256x128xf32> -> vector<256x128xf32>
    %8 = arith.mulf %7, %7 : vector<256x128xf32>
    %9 = math.log1p %8 : vector<256x128xf32>
    %c0_5 = arith.constant 0 : index
    %c0_6 = arith.constant 0 : index
    %10 = vector.load %arg14[%c0_5, %c0_6] : memref<8x128xf32, #tpu.memory_space<vmem>>, vector<8x128xf32>
    %11 = vector.shape_cast %9 : vector<256x128xf32> to vector<8x32x128xf32>
    %cst_7 = arith.constant dense<0.000000e+00> : vector<8x128xf32>
    %12 = vector.multi_reduction <add>, %11, %cst_7 [1] : vector<8x32x128xf32> to vector<8x128xf32>
    %13 = arith.addf %10, %12 : vector<8x128xf32>
    %c0_8 = arith.constant 0 : index
    %c0_9 = arith.constant 0 : index
    %14 = vector.load %arg14[%c0_8, %c0_9] : memref<8x128xf32, #tpu.memory_space<vmem>>, vector<8x128xf32>
    tpu.vector_store %arg14[%c0_8, %c0_9], %13 {strides = array<i32>} : memref<8x128xf32, #tpu.memory_space<vmem>>, vector<8x128xf32>,
    %c0_i32_10 = arith.constant 0 : i32
    %15 = arith.cmpi eq, %arg1, %c0_i32_10 : i32
    %16 = arith.extui %15 : i1 to i32
    %c0_i32_11 = arith.constant 0 : i32
    %17 = arith.cmpi ne, %16, %c0_i32_11 : i32
    scf.if %17 {
      %c0_12 = arith.constant 0 : index
      %c0_13 = arith.constant 0 : index
      %18 = vector.load %arg14[%c0_12, %c0_13] : memref<8x128xf32, #tpu.memory_space<vmem>>, vector<8x128xf32>
      %cst_14 = arith.constant 3.125000e-02 : f32
      %19 = vector.broadcast %cst_14 : f32 to vector<8x128xf32>
      %20 = arith.mulf %18, %19 : vector<8x128xf32>
      %21 = arith.truncf %20 : vector<8x128xf32> to vector<8x128xbf16>
      %c0_15 = arith.constant 0 : index
      %c0_16 = arith.constant 0 : index
      %22 = vector.load %arg4[%c0_15, %c0_16] : memref<128x128xbf16, #tpu.memory_space<vmem>>, vector<128x128xbf16>
      %cst_17 = arith.constant dense<0.000000e+00> : vector<8x128xf32>
      %23 = tpu.matmul %21, %22, %cst_17 {dimension_numbers = #tpu.dot_dimension_numbers<[1], [0], [0], [1], [0, 0, 1, 1], [], []>} : vector<8x128xbf16>, vector<128x128xbf16>, vector<8x128xf32> -> vector<8x128xf32>
      %c0_18 = arith.constant 0 : index
      %c0_19 = arith.constant 0 : index
      %24 = vector.load %arg5[%c0_18, %c0_19] : memref<1x128xf32, #tpu.memory_space<vmem>>, vector<1x128xf32>
      %25 = vector.broadcast %24 : vector<1x128xf32> to vector<8x128xf32>
      %26 = arith.addf %23, %25 : vector<8x128xf32>
      %27 = arith.mulf %26, %26 : vector<8x128xf32>
      %28 = arith.mulf %26, %27 : vector<8x128xf32>
      %cst_20 = arith.constant 4.471500e-02 : f32
      %29 = vector.broadcast %cst_20 : f32 to vector<8x128xf32>
      %30 = arith.mulf %29, %28 : vector<8x128xf32>
      %31 = arith.addf %26, %30 : vector<8x128xf32>
      %cst_21 = arith.constant 0.797884583 : f32
      %32 = vector.broadcast %cst_21 : f32 to vector<8x128xf32>
      %33 = arith.mulf %32, %31 : vector<8x128xf32>
      %34 = math.tanh %33 : vector<8x128xf32>
      %cst_22 = arith.constant 1.000000e+00 : f32
      %35 = vector.broadcast %cst_22 : f32 to vector<8x128xf32>
      %36 = arith.addf %35, %34 : vector<8x128xf32>
      %cst_23 = arith.constant 5.000000e-01 : f32
      %37 = vector.broadcast %cst_23 : f32 to vector<8x128xf32>
      %38 = arith.mulf %37, %36 : vector<8x128xf32>
      %39 = arith.mulf %26, %38 : vector<8x128xf32>
      %40 = arith.truncf %39 : vector<8x128xf32> to vector<8x128xbf16>
      %c0_24 = arith.constant 0 : index
      %c0_25 = arith.constant 0 : index
      %41 = vector.load %arg6[%c0_24, %c0_25] : memref<128x128xbf16, #tpu.memory_space<vmem>>, vector<128x128xbf16>
      %cst_26 = arith.constant dense<0.000000e+00> : vector<8x128xf32>
      %42 = tpu.matmul %40, %41, %cst_26 {dimension_numbers = #tpu.dot_dimension_numbers<[1], [0], [0], [1], [0, 0, 1, 1], [], []>} : vector<8x128xbf16>, vector<128x128xbf16>, vector<8x128xf32> -> vector<8x128xf32>
      %c0_27 = arith.constant 0 : index
      %c0_28 = arith.constant 0 : index
      %43 = vector.load %arg7[%c0_27, %c0_28] : memref<1x128xf32, #tpu.memory_space<vmem>>, vector<1x128xf32>
      %44 = vector.broadcast %43 : vector<1x128xf32> to vector<8x128xf32>
      %45 = arith.addf %42, %44 : vector<8x128xf32>
      %c0_29 = arith.constant 0 : index
      %c0_30 = arith.constant 0 : index
      %46 = vector.load %arg13[%c0_29, %c0_30] : memref<8x128xf32, #tpu.memory_space<vmem>>, vector<8x128xf32>
      tpu.vector_store %arg13[%c0_29, %c0_30], %45 {strides = array<i32>} : memref<8x128xf32, #tpu.memory_space<vmem>>, vector<8x128xf32>,
      %47 = arith.truncf %45 : vector<8x128xf32> to vector<8x128xbf16>
      %c0_31 = arith.constant 0 : index
      %c0_32 = arith.constant 0 : index
      %48 = vector.load %arg8[%c0_31, %c0_32] : memref<128x128xbf16, #tpu.memory_space<vmem>>, vector<128x128xbf16>
      %cst_33 = arith.constant dense<0.000000e+00> : vector<8x128xf32>
      %49 = tpu.matmul %47, %48, %cst_33 {dimension_numbers = #tpu.dot_dimension_numbers<[1], [0], [0], [1], [0, 0, 1, 1], [], []>} : vector<8x128xbf16>, vector<128x128xbf16>, vector<8x128xf32> -> vector<8x128xf32>
      %c0_34 = arith.constant 0 : index
      %c0_35 = arith.constant 0 : index
      %50 = vector.load %arg9[%c0_34, %c0_35] : memref<1x128xf32, #tpu.memory_space<vmem>>, vector<1x128xf32>
      %51 = vector.broadcast %50 : vector<1x128xf32> to vector<8x128xf32>
      %52 = arith.addf %49, %51 : vector<8x128xf32>
      %53 = arith.mulf %52, %52 : vector<8x128xf32>
      %54 = arith.mulf %52, %53 : vector<8x128xf32>
      %cst_36 = arith.constant 4.471500e-02 : f32
      %55 = vector.broadcast %cst_36 : f32 to vector<8x128xf32>
      %56 = arith.mulf %55, %54 : vector<8x128xf32>
      %57 = arith.addf %52, %56 : vector<8x128xf32>
      %cst_37 = arith.constant 0.797884583 : f32
      %58 = vector.broadcast %cst_37 : f32 to vector<8x128xf32>
      %59 = arith.mulf %58, %57 : vector<8x128xf32>
      %60 = math.tanh %59 : vector<8x128xf32>
      %cst_38 = arith.constant 1.000000e+00 : f32
      %61 = vector.broadcast %cst_38 : f32 to vector<8x128xf32>
      %62 = arith.addf %61, %60 : vector<8x128xf32>
      %cst_39 = arith.constant 5.000000e-01 : f32
      %63 = vector.broadcast %cst_39 : f32 to vector<8x128xf32>
      %64 = arith.mulf %63, %62 : vector<8x128xf32>
      %65 = arith.mulf %52, %64 : vector<8x128xf32>
      %66 = arith.truncf %65 : vector<8x128xf32> to vector<8x128xbf16>
      %c0_40 = arith.constant 0 : index
      %c0_41 = arith.constant 0 : index
      %67 = vector.load %arg10[%c0_40, %c0_41] : memref<128x128xbf16, #tpu.memory_space<vmem>>, vector<128x128xbf16>
      %cst_42 = arith.constant dense<0.000000e+00> : vector<8x128xf32>
      %68 = tpu.matmul %66, %67, %cst_42 {dimension_numbers = #tpu.dot_dimension_numbers<[1], [0], [0], [1], [0, 0, 1, 1], [], []>} : vector<8x128xbf16>, vector<128x128xbf16>, vector<8x128xf32> -> vector<8x128xf32>
      %c0_43 = arith.constant 0 : index
      %c0_44 = arith.constant 0 : index
      %69 = vector.load %arg11[%c0_43, %c0_44] : memref<1x128xf32, #tpu.memory_space<vmem>>, vector<1x128xf32>
      %70 = vector.broadcast %69 : vector<1x128xf32> to vector<8x128xf32>
      %71 = arith.addf %68, %70 : vector<8x128xf32>
      %72 = arith.mulf %71, %71 : vector<8x128xf32>
      %cst_45 = arith.constant dense<0.000000e+00> : vector<8xf32>
      %73 = vector.multi_reduction <add>, %72, %cst_45 [1] : vector<8x128xf32> to vector<8xf32>
      %74 = vector.shape_cast %73 : vector<8xf32> to vector<8x1xf32>
      %cst_46 = arith.constant 1.000000e-24 : f32
      %75 = vector.broadcast %cst_46 : f32 to vector<8x1xf32>
      %76 = arith.maximumf %74, %75 : vector<8x1xf32>
      %77 = math.rsqrt %76 : vector<8x1xf32>
      %78 = vector.broadcast %77 : vector<8x1xf32> to vector<8x128xf32>
      %79 = arith.mulf %71, %78 : vector<8x128xf32>
      %c0_47 = arith.constant 0 : index
      %c0_48 = arith.constant 0 : index
      %80 = vector.load %arg12[%c0_47, %c0_48] : memref<8x128xf32, #tpu.memory_space<vmem>>, vector<8x128xf32>
      tpu.vector_store %arg12[%c0_47, %c0_48], %79 {strides = array<i32>} : memref<8x128xf32, #tpu.memory_space<vmem>>, vector<8x128xf32>,
    } else {
    }
    return
  }
  func.func @transform_0(%arg0: i32, %arg1: i32) -> (i32, i32, i32) {
    %c0_i32 = arith.constant 0 : i32
    %c0_i32_0 = arith.constant 0 : i32
    return %arg0, %arg1, %c0_i32 : i32, i32, i32
  }
  func.func @transform_1(%arg0: i32, %arg1: i32) -> (i32, i32) {
    %c0_i32 = arith.constant 0 : i32
    %c0_i32_0 = arith.constant 0 : i32
    %c0_i32_1 = arith.constant 0 : i32
    return %c0_i32, %c0_i32_0 : i32, i32
  }
  func.func @transform_2(%arg0: i32, %arg1: i32) -> (i32, i32) {
    %c0_i32 = arith.constant 0 : i32
    %c0_i32_0 = arith.constant 0 : i32
    %c0_i32_1 = arith.constant 0 : i32
    return %c0_i32, %c0_i32_0 : i32, i32
  }
  func.func @transform_3(%arg0: i32, %arg1: i32) -> (i32, i32) {
    %c0_i32 = arith.constant 0 : i32
    %c0_i32_0 = arith.constant 0 : i32
    %c0_i32_1 = arith.constant 0 : i32
    return %c0_i32, %c0_i32_0 : i32, i32
  }
  func.func @transform_4(%arg0: i32, %arg1: i32) -> (i32, i32) {
    %c0_i32 = arith.constant 0 : i32
    %c0_i32_0 = arith.constant 0 : i32
    %c0_i32_1 = arith.constant 0 : i32
    return %c0_i32, %c0_i32_0 : i32, i32
  }
  func.func @transform_5(%arg0: i32, %arg1: i32) -> (i32, i32) {
    %c0_i32 = arith.constant 0 : i32
    %c0_i32_0 = arith.constant 0 : i32
    %c0_i32_1 = arith.constant 0 : i32
    return %c0_i32, %c0_i32_0 : i32, i32
  }
  func.func @transform_6(%arg0: i32, %arg1: i32) -> (i32, i32) {
    %c0_i32 = arith.constant 0 : i32
    %c0_i32_0 = arith.constant 0 : i32
    %c0_i32_1 = arith.constant 0 : i32
    return %c0_i32, %c0_i32_0 : i32, i32
  }
  func.func @transform_7(%arg0: i32, %arg1: i32) -> (i32, i32) {
    %c0_i32 = arith.constant 0 : i32
    %c0_i32_0 = arith.constant 0 : i32
    %c0_i32_1 = arith.constant 0 : i32
    return %c0_i32, %c0_i32_0 : i32, i32
  }
  func.func @transform_8(%arg0: i32, %arg1: i32) -> (i32, i32) {
    %c0_i32 = arith.constant 0 : i32
    %c0_i32_0 = arith.constant 0 : i32
    %c0_i32_1 = arith.constant 0 : i32
    return %c0_i32, %c0_i32_0 : i32, i32
  }
  func.func @transform_9(%arg0: i32, %arg1: i32) -> (i32, i32) {
    %c0_i32 = arith.constant 0 : i32
    %c0_i32_0 = arith.constant 0 : i32
    %c0_i32_1 = arith.constant 0 : i32
    return %c0_i32, %c0_i32_0 : i32, i32
  }
  func.func @transform_10(%arg0: i32, %arg1: i32) -> (i32, i32) {
    %c0_i32 = arith.constant 0 : i32
    %c0_i32_0 = arith.constant 0 : i32
    return %arg0, %c0_i32 : i32, i32
  }
  func.func @transform_11(%arg0: i32, %arg1: i32) -> (i32, i32) {
    %c0_i32 = arith.constant 0 : i32
    %c0_i32_0 = arith.constant 0 : i32
    return %arg0, %c0_i32 : i32, i32
  }
}

</mosaic_0001>

<bundles_post_ra>
// kernel: tpu_custom_call.1
= control target key start
LH: loop header
LB: loop body
LE: loop exit
PB: predicated region body
PF: predicated region fallthrough
CT: control target
= control target key end

     0   :  { %17 = vsyncpa [#allocation4], 0  ;;  %s2503_s0 = inlined_call_operand.hbm [shape: f32[8,32,128], index: 0, kind: input, shape index: {}]   ;;  %s2504_s1 = inlined_call_operand.hbm [shape: bf16[128,128], index: 1, kind: input, shape index: {}]   ;;  %s2505_s2 = inlined_call_operand.hbm [shape: bf16[128,128], index: 2, kind: input, shape index: {}]   ;;  %s2506_s3 = inlined_call_operand.vmem [shape: f32[1,128], index: 3, kind: input, shape index: {}]   ;;  %s2507_s4 = inlined_call_operand.hbm [shape: bf16[128,128], index: 4, kind: input, shape index: {}]   ;;  %s2508_s5 = inlined_call_operand.vmem [shape: f32[1,128], index: 5, kind: input, shape index: {}]   ;;  %s2509_s6 = inlined_call_operand.hbm [shape: bf16[128,128], index: 6, kind: input, shape index: {}]   ;;  %s2510_s7 = inlined_call_operand.vmem [shape: f32[1,128], index: 7, kind: input, shape index: {}]   ;;  %s2511_s8 = inlined_call_operand.hbm [shape: bf16[128,128], index: 8, kind: input, shape index: {}]   ;;  %s2512_s9 = inlined_call_operand.vmem [shape: f32[1,128], index: 9, kind: input, shape index: {}]   ;;  %s2513_s10 = inlined_call_operand.hbm [shape: f32[8,128], index: 10, kind: output, shape index: {0}]   ;;  %s2514_s11 = inlined_call_operand.hbm [shape: f32[8,128], index: 11, kind: output, shape index: {1}]  }
   0x1   :  { %18 = vsyncpa [#allocation7], 0 }
   0x2   :  { %19 = vsyncpa [#allocation10], 0 }
   0x3   :  { %20 = vsyncpa [#allocation13], 0 }
   0x4   :  { %21 = vsyncpa [#allocation5], 0 }
   0x5   :  { %22 = vsyncpa [#allocation16], 0  ;;  %s1873_s17 = smov [#allocation6]   ;;  %s1685_s21 = scalar_lea.hbm %s2504_s1, 1024 }
   0x6   :  { %s40_s18 = sshll.u32 %s1873_s17, 4  ;;  %p1686_p0 = scmp.ne.s32.totalorder %s2504_s1, %s1685_s21  ;;  %s41_s18 = int_to_ptr.vmem [resolvable:$true] %s40_s18 }
   0x7   :  { %p1689_p1 = scmp.lt.u32.totalorder %s1685_s21, %s2504_s1 }
   0x9   :  { %p1691_p2 = pnand %p1689_p1, %p1686_p0 }
   0xb   :  { %1694 = shalt.err (!%p1691_p2)
}
   0xc   :  { %s1695_s26 = scalar_lea.vmem %s41_s18, 1024  ;;  %p1700_p4 = scmp.lt.s32.totalorder %s41_s18, %s41_s18 }
   0xd   :  { %p1696_p3 = scmp.ne.s32.totalorder %s41_s18, %s1695_s26  ;;  %p1701_p5 = scmp.lt.s32.totalorder %s1695_s26, %s1695_s26 }
   0xf   :  { %p1702_p6 = por %p1701_p5, %p1700_p4 }
  0x11   :  { %p1703_p7 = pnand %p1702_p6, %p1696_p3 }
  0x13   :  { %1706 = shalt.err (!%p1703_p7)
}
  0x14   :  { %s1874_s27 = smov 64   ;;  %s1875_s28 = smov 4  }
  0x15   :  { %46 = dma.hbm_to_vmem [thread:$0]  %s2504_s1, 1024, %s41_s18, [#allocation7], %s1874_s27, %s1874_s27, %s1875_s28  }
  0x16   :  { %s1876_s12 = smov [#allocation9]   ;;  %s1877_s14 = smov [#allocation3]  }
  0x17   :  { %s66_s13 = sshll.u32 %s1876_s12, 4  ;;  %s28_s15 = sshll.u32 %s1877_s14, 4  ;;  %s67_s13 = int_to_ptr.vmem [resolvable:$true] %s66_s13  ;;  %s29_s15 = int_to_ptr.vmem [resolvable:$true] %s28_s15 }
  0x18   :  { %s1707_s19 = scalar_lea.hbm %s2507_s4, 1024 }
  0x19   :  { %p1708_p8 = scmp.ne.s32.totalorder %s2507_s4, %s1707_s19  ;;  %p1711_p9 = scmp.lt.u32.totalorder %s1707_s19, %s2507_s4 }
  0x1b   :  { %p1713_p10 = pnand %p1711_p9, %p1708_p8 }
  0x1d   :  { %1716 = shalt.err (!%p1713_p10)
}
  0x1e   :  { %s1717_s1 = scalar_lea.vmem %s67_s13, 1024  ;;  %p1722_p12 = scmp.lt.s32.totalorder %s67_s13, %s67_s13 }
  0x1f   :  { %p1718_p11 = scmp.ne.s32.totalorder %s67_s13, %s1717_s1  ;;  %p1723_p13 = scmp.lt.s32.totalorder %s1717_s1, %s1717_s1 }
  0x21   :  { %p1724_p0 = por %p1723_p13, %p1722_p12 }
  0x23   :  { %p1725_p1 = pnand %p1724_p0, %p1718_p11 }
  0x25   :  { %1728 = shalt.err (!%p1725_p1)
}
  0x26   :  { %72 = dma.hbm_to_vmem [thread:$0]  %s2507_s4, 1024, %s67_s13, [#allocation10], %s1874_s27, %s1874_s27, %s1875_s28  }
  0x27   :  { %s1729_s29 = scalar_lea.hbm %s2503_s0, 4096 }
  0x28   :  { %p1730_p2 = scmp.ne.s32.totalorder %s2503_s0, %s1729_s29  ;;  %p1733_p3 = scmp.lt.u32.totalorder %s1729_s29, %s2503_s0 }
  0x2a   :  { %p1735_p4 = pnand %p1733_p3, %p1730_p2 }
  0x2c   :  { %1738 = shalt.err (!%p1735_p4)
}
  0x2d   :  { %s1739_s17 = scalar_lea.vmem %s29_s15, 4096  ;;  %p1744_p6 = scmp.lt.s32.totalorder %s29_s15, %s29_s15 }
  0x2e   :  { %p1740_p5 = scmp.ne.s32.totalorder %s29_s15, %s1739_s17  ;;  %p1745_p7 = scmp.lt.s32.totalorder %s1739_s17, %s1739_s17 }
  0x30   :  { %p1746_p8 = por %p1745_p7, %p1744_p6 }
  0x32   :  { %p1747_p9 = pnand %p1746_p8, %p1740_p5 }
  0x34   :  { %1750 = shalt.err (!%p1747_p9)
}
  0x35   :  { %s1878_s4 = smov 128   ;;  %s1879_s13 = smov 8  }
  0x36   :  { %34 = dma.hbm_to_vmem [thread:$0]  %s2503_s0, 4096, %s29_s15, [#allocation4], %s1878_s4, %s1878_s4, %s1879_s13  }
  0x37   :  { %s1880_s21 = smov [#allocation8]   ;;  %s1881_s23 = smov [#allocation11]  }
  0x38   :  { %s52_s22 = sshll.u32 %s1880_s21, 4  ;;  %s80_s1 = sshll.u32 %s1881_s23, 4  ;;  %s53_s22 = int_to_ptr.vmem [resolvable:$true] %s52_s22  ;;  %s81_s1 = int_to_ptr.vmem [resolvable:$true] %s80_s1 }
  0x39   :  { %s1751_s25 = scalar_lea.hbm %s2505_s2, 1024 }
  0x3a   :  { %p1752_p10 = scmp.ne.s32.totalorder %s2505_s2, %s1751_s25  ;;  %p1755_p11 = scmp.lt.u32.totalorder %s1751_s25, %s2505_s2 }
  0x3c   :  { %p1757_p12 = pnand %p1755_p11, %p1752_p10 }
  0x3e   :  { %1760 = shalt.err (!%p1757_p12)
}
  0x3f   :  { %s1761_s0 = scalar_lea.vmem %s53_s22, 1024  ;;  %p1766_p0 = scmp.lt.s32.totalorder %s53_s22, %s53_s22 }
  0x40   :  { %p1762_p13 = scmp.ne.s32.totalorder %s53_s22, %s1761_s0  ;;  %p1767_p1 = scmp.lt.s32.totalorder %s1761_s0, %s1761_s0 }
  0x42   :  { %p1768_p2 = por %p1767_p1, %p1766_p0 }
  0x44   :  { %p1769_p3 = pnand %p1768_p2, %p1762_p13 }
  0x46   :  { %1772 = shalt.err (!%p1769_p3)
}
  0x47   :  { %58 = dma.hbm_to_vmem [thread:$0]  %s2505_s2, 1024, %s53_s22, [#allocation7], %s1874_s27, %s1874_s27, %s1875_s28  }
  0x48   :  { %s1773_s4 = scalar_lea.hbm %s2509_s6, 1024 }
  0x49   :  { %p1774_p4 = scmp.ne.s32.totalorder %s2509_s6, %s1773_s4  ;;  %p1777_p5 = scmp.lt.u32.totalorder %s1773_s4, %s2509_s6 }
  0x4b   :  { %p1779_p6 = pnand %p1777_p5, %p1774_p4 }
  0x4d   :  { %1782 = shalt.err (!%p1779_p6)
}
  0x4e   :  { %s1783_s23 = scalar_lea.vmem %s81_s1, 1024  ;;  %p1788_p8 = scmp.lt.s32.totalorder %s81_s1, %s81_s1 }
  0x4f   :  { %p1784_p7 = scmp.ne.s32.totalorder %s81_s1, %s1783_s23  ;;  %p1789_p9 = scmp.lt.s32.totalorder %s1783_s23, %s1783_s23 }
  0x51   :  { %p1790_p10 = por %p1789_p9, %p1788_p8 }
  0x53   :  { %p1791_p11 = pnand %p1790_p10, %p1784_p7 }
  0x55   :  { %1794 = shalt.err (!%p1791_p11)
}
  0x56   :  { %86 = dma.hbm_to_vmem [thread:$0]  %s2509_s6, 1024, %s81_s1, [#allocation10], %s1874_s27, %s1874_s27, %s1875_s28  }
  0x57   :  { %s1882_s18 = smov [#allocation12]   ;;  %s1795_s29 = scalar_lea.hbm %s2511_s8, 1024 }
  0x58   :  { %s94_s24 = sshll.u32 %s1882_s18, 4  ;;  %p1796_p12 = scmp.ne.s32.totalorder %s2511_s8, %s1795_s29  ;;  %s95_s24 = int_to_ptr.vmem [resolvable:$true] %s94_s24 }
  0x59   :  { %p1799_p13 = scmp.lt.u32.totalorder %s1795_s29, %s2511_s8 }
  0x5b   :  { %p1801_p0 = pnand %p1799_p13, %p1796_p12 }
  0x5d   :  { %1804 = shalt.err (!%p1801_p0)
}
  0x5e   :  { %s1805_s14 = scalar_lea.vmem %s95_s24, 1024  ;;  %p1810_p2 = scmp.lt.s32.totalorder %s95_s24, %s95_s24 }
  0x5f   :  { %p1806_p1 = scmp.ne.s32.totalorder %s95_s24, %s1805_s14  ;;  %p1811_p3 = scmp.lt.s32.totalorder %s1805_s14, %s1805_s14 }
  0x61   :  { %p1812_p4 = por %p1811_p3, %p1810_p2 }
  0x63   :  { %p1813_p5 = pnand %p1812_p4, %p1806_p1 }
  0x65   :  { %1816 = shalt.err (!%p1813_p5)
}
  0x66   :  { %100 = dma.hbm_to_vmem [thread:$0]  %s2511_s8, 1024, %s95_s24, [#allocation13], %s1874_s27, %s1874_s27, %s1875_s28  }
  0x67   :  { %1861 = dma.done.wait [#allocation4], 4096  }
  0x68   :  { %1862 = vsyncadd [#allocation4], 4294963200 }
  0x69   :  { %1863 = dma.done.wait [#allocation7], 2048  }
  0x6a   :  { %1864 = vsyncadd [#allocation7], 4294965248 }
  0x6b   :  { %1865 = dma.done.wait [#allocation10], 2048  }
  0x6c   :  { %1866 = vsyncadd [#allocation10], 4294965248 }
  0x6d   :  { %1867 = dma.done.wait [#allocation13], 1024  }
  0x6e   :  { %1868 = vsyncadd [#allocation13], 4294966272  ;;  %v1575_v0 = vld [vmem:[#allocation6] sm:$0xff]   ;;  %v1576_v1 = vld [vmem:[#allocation6 + $0x8] sm:$0xff]   ;;  %v1883_v57 = vmov 0.0   ;;  %vm1884_vm0 = vmmov 0  }
  0x6f   :  { %1433 = vmatprep.subr.bf16.mxu0 %v1575_v0  ;;  %v1577_v2 = vld [vmem:[#allocation6 + $0x10] sm:$0xff]   ;;  %v1578_v3 = vld [vmem:[#allocation6 + $0x18] sm:$0xff]   ;;  %v127_v4 = vld [vmem:[#allocation3] sm:$0xff]  ;;  %1481 = vmatprep.subr.bf16.mxu1 %v1883_v57 }
  0x70   :  { %1434 = vmatpush3.bf16.msra.mxu0 %v1575_v0  ;;  %v128_v5 = vld [vmem:[#allocation3 + $0x8] sm:$0xff]  ;;  %v1579_v7 = vld [vmem:[#allocation6 + $0x20] sm:$0xff]   ;;  %v1581_v9 = vld [vmem:[#allocation6 + $0x30] sm:$0xff]   ;;  %1497 = vmatprep.mubr.msk.bf16.mxu1 %vm1884_vm0, %v1883_v57 }
  0x71   :  { %1435 = vmatprep.subr.bf16.mxu0 %v1576_v1  ;;  %v159_v6 = vpack.c.bf16 %v128_v5, %v127_v4  ;;  %v1580_v8 = vld [vmem:[#allocation6 + $0x28] sm:$0xff]   ;;  %v1582_v10 = vld [vmem:[#allocation6 + $0x38] sm:$0xff]   ;;  %v129_v11 = vld [vmem:[#allocation3 + $0x10] sm:$0xff] }
  0x72   :  { %v130_v12 = vld [vmem:[#allocation3 + $0x18] sm:$0xff]  ;;  %v131_v13 = vld [vmem:[#allocation3 + $0x20] sm:$0xff]  ;;  %v132_v14 = vld [vmem:[#allocation3 + $0x28] sm:$0xff] }
  0x73   :  { %1449 = vmatprep.mubr.bf16.mxu0 %v159_v6  ;;  %v160_v15 = vpack.c.bf16 %v130_v12, %v129_v11  ;;  %v161_v16 = vpack.c.bf16 %v132_v14, %v131_v13  ;;  %v133_v17 = vld [vmem:[#allocation3 + $0x30] sm:$0xff]  ;;  %v134_v18 = vld [vmem:[#allocation3 + $0x38] sm:$0xff]  ;;  %v135_v19 = vld [vmem:[#allocation3 + $0x40] sm:$0xff] }
  0x74   :  { %1436 = vmatpush3.bf16.msra.mxu0 %v1576_v1  ;;  %v136_v20 = vld [vmem:[#allocation3 + $0x48] sm:$0xff]  ;;  %v162_v21 = vpack.c.bf16 %v134_v18, %v133_v17  ;;  %v137_v23 = vld [vmem:[#allocation3 + $0x50] sm:$0xff]  ;;  %v138_v24 = vld [vmem:[#allocation3 + $0x58] sm:$0xff] }
  0x75   :  { %1437 = vmatprep.subr.bf16.mxu0 %v1577_v2  ;;  %v163_v22 = vpack.c.bf16 %v136_v20, %v135_v19  ;;  %v139_v25 = vld [vmem:[#allocation3 + $0x60] sm:$0xff]  ;;  %v140_v26 = vld [vmem:[#allocation3 + $0x68] sm:$0xff]  ;;  %v164_v27 = vpack.c.bf16 %v138_v24, %v137_v23  ;;  %v141_v29 = vld [vmem:[#allocation3 + $0x70] sm:$0xff] }
  0x76   :  { %v165_v28 = vpack.c.bf16 %v140_v26, %v139_v25  ;;  %v142_v30 = vld [vmem:[#allocation3 + $0x78] sm:$0xff]  ;;  %v143_v31 = vld [vmem:[#allocation3 + $0x80] sm:$0xff]  ;;  %v144_v32 = vld [vmem:[#allocation3 + $0x88] sm:$0xff] }
  0x77   :  { %v166_v33 = vpack.c.bf16 %v142_v30, %v141_v29  ;;  %v167_v34 = vpack.c.bf16 %v144_v32, %v143_v31  ;;  %v145_v35 = vld [vmem:[#allocation3 + $0x90] sm:$0xff]  ;;  %v146_v36 = vld [vmem:[#allocation3 + $0x98] sm:$0xff]  ;;  %v147_v37 = vld [vmem:[#allocation3 + $0xa0] sm:$0xff] }
  0x78   :  { %1438 = vmatpush3.bf16.msra.mxu0 %v1577_v2  ;;  %v148_v38 = vld [vmem:[#allocation3 + $0xa8] sm:$0xff]  ;;  %v168_v39 = vpack.c.bf16 %v146_v36, %v145_v35  ;;  %v149_v41 = vld [vmem:[#allocation3 + $0xb0] sm:$0xff]  ;;  %v150_v42 = vld [vmem:[#allocation3 + $0xb8] sm:$0xff] }
  0x79   :  { %1439 = vmatprep.subr.bf16.mxu0 %v1578_v3  ;;  %v169_v40 = vpack.c.bf16 %v148_v38, %v147_v37  ;;  %v151_v43 = vld [vmem:[#allocation3 + $0xc0] sm:$0xff]  ;;  %v152_v44 = vld [vmem:[#allocation3 + $0xc8] sm:$0xff]  ;;  %v170_v45 = vpack.c.bf16 %v150_v42, %v149_v41  ;;  %v153_v47 = vld [vmem:[#allocation3 + $0xd0] sm:$0xff] }
  0x7a   :  { %v171_v46 = vpack.c.bf16 %v152_v44, %v151_v43  ;;  %v154_v48 = vld [vmem:[#allocation3 + $0xd8] sm:$0xff]  ;;  %v155_v49 = vld [vmem:[#allocation3 + $0xe0] sm:$0xff]  ;;  %v156_v50 = vld [vmem:[#allocation3 + $0xe8] sm:$0xff] }
  0x7b   :  { %v172_v51 = vpack.c.bf16 %v154_v48, %v153_v47  ;;  %v173_v52 = vpack.c.bf16 %v156_v50, %v155_v49  ;;  %v157_v53 = vld [vmem:[#allocation3 + $0xf0] sm:$0xff]  ;;  %v158_v54 = vld [vmem:[#allocation3 + $0xf8] sm:$0xff]  ;;  %v1583_v56 = vld [vmem:[#allocation8] sm:$0xff]  }
  0x7c   :  { %1440 = vmatpush3.bf16.msra.mxu0 %v1578_v3  ;;  %v174_v55 = vpack.c.bf16 %v158_v54, %v157_v53  ;;  %1482 = vmatpush3.bf16.msra.mxu1 %v1583_v56  ;;  %v1584_v58 = vld [vmem:[#allocation8 + $0x8] sm:$0xff]   ;;  %v1585_v59 = vld [vmem:[#allocation8 + $0x10] sm:$0xff]   ;;  %v1586_v60 = vld [vmem:[#allocation8 + $0x18] sm:$0xff]  }
  0x7d   :  { %1441 = vmatprep.subr.bf16.mxu0 %v1579_v7  ;;  %1483 = vmatprep.subr.bf16.mxu1 %v1883_v57  ;;  %v1587_v61 = vld [vmem:[#allocation8 + $0x20] sm:$0xff]   ;;  %v1588_v62 = vld [vmem:[#allocation8 + $0x28] sm:$0xff]   ;;  %v1589_v63 = vld [vmem:[#allocation8 + $0x30] sm:$0xff]  }
  0x7e   :  { %v1590_v0 = vld [vmem:[#allocation8 + $0x38] sm:$0xff]  }
  0x80   :  { %1442 = vmatpush3.bf16.msra.mxu0 %v1579_v7  ;;  %1484 = vmatpush3.bf16.msra.mxu1 %v1584_v58 }
  0x81   :  { %1443 = vmatprep.subr.bf16.mxu0 %v1580_v8  ;;  %1485 = vmatprep.subr.bf16.mxu1 %v1883_v57 }
  0x84   :  { %1444 = vmatpush3.bf16.msra.mxu0 %v1580_v8  ;;  %1486 = vmatpush3.bf16.msra.mxu1 %v1585_v59 }
  0x85   :  { %1445 = vmatprep.subr.bf16.mxu0 %v1581_v9  ;;  %1487 = vmatprep.subr.bf16.mxu1 %v1883_v57 }
  0x88   :  { %1446 = vmatpush3.bf16.msra.mxu0 %v1581_v9  ;;  %1488 = vmatpush3.bf16.msra.mxu1 %v1586_v60 }
  0x89   :  { %1447 = vmatprep.subr.bf16.mxu0 %v1582_v10  ;;  %1489 = vmatprep.subr.bf16.mxu1 %v1883_v57 }
  0x8c   :  { %1448 = vmatpush3.bf16.msra.mxu0 %v1582_v10  ;;  %1490 = vmatpush3.bf16.msra.mxu1 %v1587_v61 }
  0x8d   :  { %1521 = vmatprep.subr.bf16.mxu0 %v1883_v57  ;;  %1491 = vmatprep.subr.bf16.mxu1 %v1883_v57 }
  0x8f   :  { %1450 = vmatmul.mubr.bf16.vlgmr.msra.gmra.mrb[0].mxu0 %v160_v15 }
  0x90   :  { %1453 = vmatprep.mubr.bf16.mxu0 %v161_v16  ;;  %1492 = vmatpush3.bf16.msra.mxu1 %v1588_v62 }
  0x91   :  { %1493 = vmatprep.subr.bf16.mxu1 %v1883_v57 }
  0x94   :  { %1494 = vmatpush3.bf16.msra.mxu1 %v1589_v63 }
  0x95   :  { %1495 = vmatprep.subr.bf16.mxu1 %v1883_v57 }
  0x97   :  { %1454 = vmatmul.mubr.bf16.gmra.mrb[4].mxu0 %v162_v21 }
  0x98   :  { %1457 = vmatprep.mubr.bf16.mxu0 %v163_v22  ;;  %1496 = vmatpush3.bf16.msra.mxu1 %v1590_v0 }
  0x99   :  { %1501 = vmatprep.subr.bf16.mxu1 %v1883_v57 }
  0x9f   :  { %1458 = vmatmul.mubr.bf16.gmra.mrb[8].mxu0 %v164_v27 }
  0xa0   :  { %1461 = vmatprep.mubr.bf16.mxu0 %v165_v28 }
  0xa7   :  { %1462 = vmatmul.mubr.bf16.gmra.mrb[12].mxu0 %v166_v33 }
  0xa8   :  { %1465 = vmatprep.mubr.bf16.mxu0 %v167_v34 }
  0xaf   :  { %1466 = vmatmul.mubr.bf16.gmra.mrb[16].mxu0 %v168_v39 }
  0xb0   :  { %1469 = vmatprep.mubr.bf16.mxu0 %v169_v40 }
  0xb7   :  { %1470 = vmatmul.mubr.bf16.gmra.mrb[20].mxu0 %v170_v45 }
  0xb8   :  { %1473 = vmatprep.mubr.bf16.mxu0 %v171_v46 }
  0xbf   :  { %1474 = vmatmul.mubr.bf16.gmra.mrb[24].mxu0 %v172_v51 }
  0xc0   :  { %1477 = vmatprep.mubr.bf16.mxu0 %v173_v52 }
  0xc7   :  { %1478 = vmatmul.mubr.bf16.gmra.mrb[28].mxu0 %v174_v55 }
  0xc8   :  { %1537 = vmatprep.mubr.msk.bf16.mxu0 %vm1884_vm0, %v1883_v57 }
 0x162   :  { %v1451_v1 = vpop.f32.mrb[0].mxu0 }
 0x163   :  { %v402_v2 = vmul.f32 %v1451_v1, %v1451_v1  ;;  %v273_v3 = vpop.f32.mrb[1].mxu0 }
 0x164   :  { %v400_v4 = vmul.f32 %v273_v3, %v273_v3  ;;  %v1452_v5 = vpop.f32.mrb[2].mxu0 }
 0x165   :  { %v450_v6 = vadd.f32 1.0, %v402_v2  ;;  %v2048_v7 = vmul.f32 %v1452_v5, %v1452_v5  ;;  %v276_v8 = vpop.f32.mrb[3].mxu0  ;;  %v453_v13 = vmul.f32 -0.5, %v402_v2  ;;  %v456_v20 = vand.u32 2147483647, %v402_v2 }
 0x166   :  { %v432_v9 = vadd.f32 1.0, %v400_v4  ;;  %v401_v10 = vmul.f32 %v276_v8, %v276_v8  ;;  %v435_v15 = vmul.f32 -0.5, %v400_v4  ;;  %v438_v24 = vand.u32 2147483647, %v400_v4 }
 0x167   :  { %v459_v11 = vadd.f32 1.0, %v2048_v7  ;;  %v454_v23 = vadd.f32 1.0, %v453_v13  ;;  %v462_v29 = vmul.f32 -0.5, %v2048_v7  ;;  %vm2061_vm1 = vcmp.lt.f32.partialorder %v456_v20, 0.0004427343 }
 0x168   :  { %1615 = vlog2.f32 %v432_v9  ;;  %v441_v12 = vadd.f32 1.0, %v401_v10  ;;  %v444_v25 = vmul.f32 -0.5, %v401_v10  ;;  %v436_v27 = vadd.f32 1.0, %v435_v15 }
 0x169   :  { %1617 = vlog2.f32 %v450_v6  ;;  %v447_v30 = vand.u32 2147483647, %v401_v10  ;;  %v455_v35 = vmul.f32 %v454_v23, %v402_v2  ;;  %vm2067_vm2 = vcmp.lt.f32.partialorder %v438_v24, 0.0004427343 }
 0x16a   :  { %1619 = vlog2.f32 %v459_v11  ;;  %v1455_v14 = vpop.f32.mrb[4].mxu0  ;;  %v465_v37 = vand.u32 2147483647, %v2048_v7  ;;  %v445_v38 = vadd.f32 1.0, %v444_v25  ;;  %v437_v41 = vmul.f32 %v436_v27, %v400_v4 }
 0x16b   :  { %1621 = vlog2.f32 %v441_v12  ;;  %v2051_v16 = vmul.f32 %v1455_v14, %v1455_v14  ;;  %v289_v17 = vpop.f32.mrb[5].mxu0  ;;  %v463_v46 = vadd.f32 1.0, %v462_v29  ;;  %vm2074_vm3 = vcmp.lt.f32.partialorder %v447_v30, 0.0004427343 }
 0x16c   :  { %v2053_v18 = vmul.f32 %v289_v17, %v289_v17  ;;  %v1456_v19 = vpop.f32.mrb[6].mxu0  ;;  %v446_v56 = vmul.f32 %v445_v38, %v401_v10  ;;  %vm2093_vm4 = vcmp.lt.f32.partialorder %v465_v37, 0.0004427343 }
 0x16d   :  { %v2055_v21 = vmul.f32 %v1456_v19, %v1456_v19  ;;  %v292_v22 = vpop.f32.mrb[7].mxu0  ;;  %v486_v28 = vadd.f32 1.0, %v2051_v16  ;;  %v489_v42 = vmul.f32 -0.5, %v2051_v16  ;;  %v492_v61 = vand.u32 2147483647, %v2051_v16 }
 0x16e   :  { %v468_v26 = vadd.f32 1.0, %v2053_v18  ;;  %v2065_v33 = vmul.f32 %v292_v22, %v292_v22  ;;  %v471_v50 = vmul.f32 -0.5, %v2053_v18  ;;  %v474_v51 = vand.u32 2147483647, %v2053_v18 }
 0x16f   :  { %v495_v31 = vadd.f32 1.0, %v2055_v21  ;;  %v490_v60 = vadd.f32 1.0, %v489_v42  ;;  %v464_v4 = vmul.f32 %v463_v46, %v2048_v7  ;;  %v498_v11 = vmul.f32 -0.5, %v2055_v21 }
 0x170   :  { %1623 = vlog2.f32 %v468_v26  ;;  %v477_v43 = vadd.f32 1.0, %v2065_v33  ;;  %v480_v62 = vmul.f32 -0.5, %v2065_v33  ;;  %v472_v8 = vadd.f32 1.0, %v471_v50 }
 0x171   :  { %1625 = vlog2.f32 %v486_v28  ;;  %vm2099_vm5 = vcmp.lt.f32.partialorder %v474_v51, 0.0004427343  ;;  %v483_v12 = vand.u32 2147483647, %v2065_v33  ;;  %vm2105_vm6 = vcmp.lt.f32.partialorder %v492_v61, 0.0004427343 }
 0x172   :  { %v1616_v34 = vpop.eup %1615  ;;  %v1459_v39 = vpop.f32.mrb[8].mxu0  ;;  %1627 = vlog2.f32 %v495_v31  ;;  %v481_v17 = vadd.f32 1.0, %v480_v62  ;;  %v491_v23 = vmul.f32 %v490_v60, %v2051_v16  ;;  %v473_v28 = vmul.f32 %v472_v8, %v2053_v18 }
 0x173   :  { %v1618_v40 = vpop.eup %1617  ;;  %v434_v45 = vmul.f32 0.6931472, %v1616_v34  ;;  %v305_v48 = vpop.f32.mrb[9].mxu0  ;;  %1629 = vlog2.f32 %v477_v43  ;;  %v2080_v52 = vmul.f32 %v1459_v39, %v1459_v39  ;;  %v501_v29 = vand.u32 2147483647, %v2055_v21 }
 0x174   :  { %v1620_v44 = vpop.eup %1619  ;;  %v1460_v53 = vpop.f32.mrb[10].mxu0  ;;  %v452_v54 = vmul.f32 0.6931472, %v1618_v40  ;;  %v2082_v58 = vmul.f32 %v305_v48, %v305_v48  ;;  %vm2121_vm7 = vcmp.lt.f32.partialorder %v483_v12, 0.0004427343  ;;  %v482_v39 = vmul.f32 %v481_v17, %v2065_v33 }
 0x175   :  { %v1622_v49 = vpop.eup %1621  ;;  %v308_v59 = vpop.f32.mrb[11].mxu0  ;;  %v522_v63 = vadd.f32 1.0, %v2080_v52  ;;  %v440_v0 = vsel %vm2067_vm2, %v437_v41, %v434_v45  ;;  %v461_v1 = vmul.f32 0.6931472, %v1620_v44  ;;  %v2109_v19 = vmul.f32 %v1460_v53, %v1460_v53 }
 0x176   :  { %v443_v55 = vmul.f32 0.6931472, %v1622_v49  ;;  %v504_v3 = vadd.f32 1.0, %v2082_v58  ;;  %v458_v9 = vsel %vm2061_vm1, %v455_v35, %v452_v54  ;;  %v2114_v24 = vmul.f32 %v308_v59, %v308_v59 }
 0x177   :  { %1631 = vlog2.f32 %v522_v63  ;;  %v467_v22 = vsel %vm2093_vm4, %v464_v4, %v461_v1  ;;  %v531_v30 = vadd.f32 1.0, %v2109_v19  ;;  %v499_v35 = vadd.f32 1.0, %v498_v11 }
 0x178   :  { %v449_v2 = vsel %vm2074_vm3, %v446_v56, %v443_v55  ;;  %1633 = vlog2.f32 %v504_v3  ;;  %v513_v16 = vadd.f32 1.0, %v2114_v24  ;;  %v525_v18 = vmul.f32 -0.5, %v2080_v52 }
 0x179   :  { %v721_v6 = vadd.f32 %v449_v2, %v440_v0  ;;  %1635 = vlog2.f32 %v531_v30  ;;  %v507_v42 = vmul.f32 -0.5, %v2082_v58  ;;  %v528_v44 = vand.u32 2147483647, %v2080_v52 }
 0x17a   :  { %v1463_v13 = vpop.f32.mrb[12].mxu0  ;;  %v1624_v14 = vpop.eup %1623  ;;  %1637 = vlog2.f32 %v513_v16  ;;  %v534_v45 = vmul.f32 -0.5, %v2109_v19  ;;  %v516_v46 = vmul.f32 -0.5, %v2114_v24  ;;  %v526_v53 = vadd.f32 1.0, %v525_v18 }
 0x17b   :  { %v722_v7 = vadd.f32 %v721_v6, %v458_v9  ;;  %v321_v20 = vpop.f32.mrb[13].mxu0  ;;  %v1626_v26 = vpop.eup %1625  ;;  %v470_v34 = vmul.f32 0.6931472, %v1624_v14  ;;  %v2136_v49 = vmul.f32 %v1463_v13, %v1463_v13  ;;  %v510_v54 = vand.u32 2147483647, %v2082_v58 }
 0x17c   :  { %v1464_v25 = vpop.f32.mrb[14].mxu0  ;;  %v1628_v32 = vpop.eup %1627  ;;  %v488_v40 = vmul.f32 0.6931472, %v1626_v26  ;;  %v2139_v55 = vmul.f32 %v321_v20, %v321_v20  ;;  %v500_v60 = vmul.f32 %v499_v35, %v2055_v21  ;;  %vm502_vm8 = vcmp.lt.f32.partialorder %v501_v29, 0.0004427343 }
 0x17d   :  { %v723_v27 = vadd.f32 %v722_v7, %v467_v22  ;;  %v2119_v31 = vpop.f32.mrb[15].mxu0  ;;  %v1630_v37 = vpop.eup %1629  ;;  %v497_v43 = vmul.f32 0.6931472, %v1628_v32  ;;  %v476_v48 = vsel %vm2099_vm5, %v473_v28, %v470_v34  ;;  %v508_v61 = vadd.f32 1.0, %v507_v42 }
 0x17e   :  { %v479_v41 = vmul.f32 0.6931472, %v1630_v37  ;;  %v494_v59 = vsel %vm2105_vm6, %v491_v23, %v488_v40  ;;  %vm2144_vm9 = vcmp.lt.f32.partialorder %v528_v44, 0.0004427343  ;;  %v535_v1 = vadd.f32 1.0, %v534_v45 }
 0x17f   :  { %v724_v38 = vrot.slane %v723_v27, 4  ;;  %v517_v2 = vadd.f32 1.0, %v516_v46  ;;  %v503_v6 = vsel %vm502_vm8, %v500_v60, %v497_v43  ;;  %v558_v8 = vadd.f32 1.0, %v2136_v49 }
 0x180   :  { %v485_v33 = vsel %vm2121_vm7, %v482_v39, %v479_v41  ;;  %v2151_v9 = vmul.f32 %v1464_v25, %v1464_v25  ;;  %v527_v11 = vmul.f32 %v526_v53, %v2080_v52  ;;  %vm2156_vm10 = vcmp.lt.f32.partialorder %v510_v54, 0.0004427343 }
 0x181   :  { %v725_v47 = vadd.f32 %v724_v38, %v723_v27  ;;  %v730_v51 = vadd.f32 %v485_v33, %v476_v48  ;;  %v1632_v62 = vpop.eup %1631  ;;  %v540_v13 = vadd.f32 1.0, %v2139_v55  ;;  %v509_v7 = vmul.f32 %v508_v61, %v2082_v58 }
 0x182   :  { %v1467_v50 = vpop.f32.mrb[16].mxu0  ;;  %v1634_v4 = vpop.eup %1633  ;;  %v524_v14 = vmul.f32 0.6931472, %v1632_v62  ;;  %v537_v15 = vand.u32 2147483647, %v2109_v19  ;;  %v536_v25 = vmul.f32 %v535_v1, %v2109_v19  ;;  %v518_v52 = vmul.f32 %v517_v2, %v2114_v24 }
 0x183   :  { %v337_v56 = vpop.f32.mrb[17].mxu0  ;;  %v731_v63 = vadd.f32 %v730_v51, %v494_v59  ;;  %v726_v5 = vrot.slane %v725_v47, 2  ;;  %v519_v17 = vand.u32 2147483647, %v2114_v24  ;;  %v1636_v20 = vpop.eup %1635  ;;  %v506_v23 = vmul.f32 0.6931472, %v1634_v4 }
 0x184   :  { %v2148_v3 = vpop.f32.mrb[18].mxu0  ;;  %v1638_v26 = vpop.eup %1637  ;;  %1639 = vlog2.f32 %v558_v8  ;;  %v561_v28 = vmul.f32 -0.5, %v2136_v49  ;;  %v567_v29 = vadd.f32 1.0, %v2151_v9  ;;  %v2172_v34 = vmul.f32 %v2119_v31, %v2119_v31 }
 0x185   :  { %v2153_v21 = vpop.f32.mrb[19].mxu0  ;;  %v732_v10 = vadd.f32 %v731_v63, %v503_v6  ;;  %v727_v27 = vadd.f32 %v726_v5, %v725_v47  ;;  %v515_v32 = vmul.f32 0.6931472, %v1638_v26  ;;  %1641 = vlog2.f32 %v540_v13 }
 0x186   :  { %v530_v19 = vsel %vm2144_vm9, %v527_v11, %v524_v14  ;;  %vm520_vm11 = vcmp.lt.f32.partialorder %v519_v17, 0.0004427343  ;;  %v564_v24 = vand.u32 2147483647, %v2136_v49  ;;  %v543_v36 = vmul.f32 -0.5, %v2139_v55 }
 0x187   :  { %v733_v22 = vrot.slane %v732_v10, 4  ;;  %v512_v37 = vsel %vm2156_vm10, %v509_v7, %v506_v23  ;;  %v533_v38 = vmul.f32 0.6931472, %v1636_v20  ;;  %v521_v39 = vsel %vm520_vm11, %v518_v52, %v515_v32 }
 0x188   :  { %v549_v31 = vadd.f32 1.0, %v2172_v34  ;;  %v739_v40 = vadd.f32 %v521_v39, %v512_v37  ;;  %1643 = vlog2.f32 %v567_v29  ;;  %v2187_v41 = vmul.f32 %v1467_v50, %v1467_v50 }
 0x189   :  { %v734_v58 = vadd.f32 %v733_v22, %v732_v10  ;;  %v2189_v42 = vmul.f32 %v337_v56, %v337_v56  ;;  %v728_v43 = vrot.slane %v727_v27, 1  ;;  %v562_v45 = vadd.f32 1.0, %v561_v28 }
 0x18a   :  { %v2168_v30 = vpop.f32.mrb[20].mxu0  ;;  %1645 = vlog2.f32 %v549_v31  ;;  %vm538_vm12 = vcmp.lt.f32.partialorder %v537_v15, 0.0004427343  ;;  %v740_v46 = vadd.f32 %v739_v40, %v530_v19  ;;  %v544_v47 = vadd.f32 1.0, %v543_v36 }
 0x18b   :  { %v2174_v35 = vpop.f32.mrb[21].mxu0  ;;  %v735_v44 = vrot.slane %v734_v58, 2  ;;  %v570_v48 = vmul.f32 -0.5, %v2151_v9  ;;  %v539_v33 = vsel %vm538_vm12, %v536_v25, %v533_v38  ;;  %v546_v51 = vand.u32 2147483647, %v2139_v55 }
 0x18c   :  { %v2180_v16 = vpop.f32.mrb[22].mxu0  ;;  %v741_v53 = vadd.f32 %v740_v46, %v539_v33  ;;  %v552_v54 = vmul.f32 -0.5, %v2172_v34  ;;  %v594_v50 = vadd.f32 1.0, %v2187_v41  ;;  %v576_v56 = vadd.f32 1.0, %v2189_v42 }
 0x18d   :  { %v2185_v18 = vpop.f32.mrb[23].mxu0  ;;  %v2198_v60 = vadd.f32 %v728_v43, %v727_v27  ;;  %v736_v61 = vadd.f32 %v735_v44, %v734_v58  ;;  %v563_v62 = vmul.f32 %v562_v45, %v2136_v49  ;;  %vm2201_vm13 = vcmp.lt.f32.partialorder %v564_v24, 0.0004427343 }
 0x18e   :  { %v1640_v1 = vpop.eup %1639  ;;  %v545_v2 = vmul.f32 %v544_v47, %v2139_v55  ;;  %v571_v4 = vadd.f32 1.0, %v570_v48  ;;  %v573_v5 = vand.u32 2147483647, %v2151_v9  ;;  %v2211_v6 = vmul.f32 %v2148_v3, %v2148_v3 }
 0x18f   :  { %v1642_v10 = vpop.eup %1641  ;;  %vm2215_vm14 = vcmp.lt.f32.partialorder %v546_v51, 0.0004427343  ;;  %v555_v11 = vand.u32 2147483647, %v2172_v34  ;;  %1647 = vlog2.f32 %v576_v56  ;;  %v2222_v55 = vmul.f32 %v2153_v21, %v2153_v21 }
 0x190   :  { %v742_v13 = vrot.slane %v741_v53, 4  ;;  %v553_v14 = vadd.f32 1.0, %v552_v54  ;;  %1649 = vlog2.f32 %v594_v50  ;;  %v603_v3 = vadd.f32 1.0, %v2211_v6 }
 0x191   :  { %v737_v7 = vrot.slane %v736_v61, 1  ;;  %v560_v15 = vmul.f32 0.6931472, %v1640_v1  ;;  %v597_v17 = vmul.f32 -0.5, %v2187_v41  ;;  %v585_v20 = vadd.f32 1.0, %v2222_v55 }
 0x192   :  { %v2196_v59 = vpop.f32.mrb[24].mxu0  ;;  %v1644_v22 = vpop.eup %1643  ;;  %v542_v23 = vmul.f32 0.6931472, %v1642_v10  ;;  %v572_v25 = vmul.f32 %v571_v4, %v2151_v9  ;;  %vm2230_vm15 = vcmp.lt.f32.partialorder %v573_v5, 0.0004427343  ;;  %1651 = vlog2.f32 %v603_v3 }
 0x193   :  { %v2205_v0 = vpop.f32.mrb[25].mxu0  ;;  %vm2234_vm1 = vcmp.lt.f32.partialorder %v555_v11, 0.0004427343  ;;  %v600_v27 = vand.u32 2147483647, %v2187_v41  ;;  %v579_v28 = vmul.f32 -0.5, %v2189_v42  ;;  %1653 = vlog2.f32 %v585_v20 }
 0x194   :  { %v2213_v8 = vpop.f32.mrb[26].mxu0  ;;  %v1646_v52 = vpop.eup %1645  ;;  %v743_v29 = vadd.f32 %v742_v13, %v741_v53  ;;  %v554_v32 = vmul.f32 %v553_v14, %v2172_v34  ;;  %v2243_v9 = vmul.f32 %v2168_v30, %v2168_v30  ;;  %v2247_v24 = vadd.f32 %v737_v7, %v736_v61 }
 0x195   :  { %v2224_v12 = vpop.f32.mrb[27].mxu0  ;;  %v551_v58 = vmul.f32 0.6931472, %v1646_v52  ;;  %v566_v36 = vsel %vm2201_vm13, %v563_v62, %v560_v15  ;;  %v598_v37 = vadd.f32 1.0, %v597_v17  ;;  %v606_v38 = vmul.f32 -0.5, %v2211_v6 }
 0x196   :  { %v548_v31 = vsel %vm2215_vm14, %v545_v2, %v542_v23  ;;  %v569_v34 = vmul.f32 0.6931472, %v1644_v22  ;;  %v588_v40 = vmul.f32 -0.5, %v2222_v55  ;;  %v580_v45 = vadd.f32 1.0, %v579_v28 }
 0x197   :  { %v557_v30 = vsel %vm2234_vm1, %v554_v32, %v551_v58  ;;  %v582_v46 = vand.u32 2147483647, %v2189_v42  ;;  %v2264_v47 = vmul.f32 %v2174_v35, %v2174_v35  ;;  %v744_v33 = vrot.slane %v743_v29, 2 }
 0x198   :  { %v748_v44 = vadd.f32 %v557_v30, %v548_v31  ;;  %v609_v51 = vand.u32 2147483647, %v2211_v6  ;;  %v630_v53 = vadd.f32 1.0, %v2243_v9  ;;  %v2272_v54 = vmul.f32 %v2180_v16, %v2180_v16 }
 0x199   :  { %v1648_v50 = vpop.eup %1647  ;;  %vm2274_vm2 = vcmp.lt.f32.partialorder %v600_v27, 0.0004427343  ;;  %v607_v62 = vadd.f32 1.0, %v606_v38  ;;  %v612_v35 = vadd.f32 1.0, %v2264_v47  ;;  %v2281_v63 = vmul.f32 %v2185_v18, %v2185_v18 }
 0x19a   :  { %v2245_v19 = vpop.f32.mrb[28].mxu0  ;;  %v749_v56 = vadd.f32 %v748_v44, %v566_v36  ;;  %v1650_v1 = vpop.eup %1649  ;;  %v575_v2 = vsel %vm2230_vm15, %v572_v25, %v569_v34  ;;  %v599_v16 = vmul.f32 %v598_v37, %v2187_v41  ;;  %v589_v4 = vadd.f32 1.0, %v588_v40 }
 0x19b   :  { %v2252_v39 = vpop.f32.mrb[29].mxu0  ;;  %v639_v5 = vadd.f32 1.0, %v2272_v54  ;;  %vm2287_vm3 = vcmp.lt.f32.partialorder %v582_v46, 0.0004427343  ;;  %v591_v11 = vand.u32 2147483647, %v2222_v55  ;;  %1655 = vlog2.f32 %v612_v35 }
 0x19c   :  { %v2259_v43 = vpop.f32.mrb[30].mxu0  ;;  %v750_v10 = vadd.f32 %v749_v56, %v575_v2  ;;  %v1652_v13 = vpop.eup %1651  ;;  %v578_v18 = vmul.f32 0.6931472, %v1648_v50  ;;  %v581_v14 = vmul.f32 %v580_v45, %v2189_v42  ;;  %vm2293_vm4 = vcmp.lt.f32.partialorder %v609_v51, 0.0004427343 }
 0x19d   :  { %v2266_v48 = vpop.f32.mrb[31].mxu0  ;;  %1657 = vlog2.f32 %v630_v53  ;;  %v1654_v41 = vpop.eup %1653  ;;  %v2297_v7 = vadd.f32 %v744_v33, %v743_v29  ;;  %v596_v15 = vmul.f32 0.6931472, %v1650_v1  ;;  %v608_v17 = vmul.f32 %v607_v62, %v2211_v6 }
 0x19e   :  { %v621_v20 = vadd.f32 1.0, %v2281_v63  ;;  %v587_v22 = vmul.f32 0.6931472, %v1654_v41  ;;  %v590_v23 = vmul.f32 %v589_v4, %v2222_v55  ;;  %v633_v25 = vmul.f32 -0.5, %v2243_v9 }
 0x19f   :  { %1659 = vlog2.f32 %v639_v5  ;;  %vm592_vm5 = vcmp.lt.f32.partialorder %v591_v11, 0.0004427343  ;;  %v615_v42 = vmul.f32 -0.5, %v2264_v47  ;;  %v2306_v21 = vmul.f32 %v2196_v59, %v2196_v59 }
 0x1a0   :  { %1661 = vlog2.f32 %v621_v20  ;;  %v584_v52 = vsel %vm2287_vm3, %v581_v14, %v578_v18  ;;  %v605_v6 = vmul.f32 0.6931472, %v1652_v13  ;;  %v593_v26 = vsel %vm592_vm5, %v590_v23, %v587_v22 }
 0x1a1   :  { %v642_v27 = vmul.f32 -0.5, %v2272_v54  ;;  %v751_v28 = vrot.slane %v750_v10, 4  ;;  %v757_v55 = vadd.f32 %v593_v26, %v584_v52  ;;  %v636_v29 = vand.u32 2147483647, %v2243_v9 }
 0x1a2   :  { %v624_v58 = vmul.f32 -0.5, %v2281_v63  ;;  %v602_v32 = vsel %vm2274_vm2, %v599_v16, %v596_v15  ;;  %v634_v36 = vadd.f32 1.0, %v633_v25  ;;  %v618_v59 = vand.u32 2147483647, %v2264_v47 }
 0x1a3   :  { %v645_v37 = vand.u32 2147483647, %v2272_v54  ;;  %v758_v38 = vadd.f32 %v757_v55, %v602_v32  ;;  %v666_v31 = vadd.f32 1.0, %v2306_v21  ;;  %v2320_v34 = vmul.f32 %v2205_v0, %v2205_v0 }
 0x1a4   :  { %v2324_v30 = vmul.f32 %v2213_v8, %v2213_v8  ;;  %v746_v40 = vrot.slane %v2297_v7, 1  ;;  %v611_v44 = vsel %vm2293_vm4, %v608_v17, %v605_v6  ;;  %v616_v45 = vadd.f32 1.0, %v615_v42 }
 0x1a5   :  { %v643_v46 = vadd.f32 1.0, %v642_v27  ;;  %v1656_v33 = vpop.eup %1655  ;;  %v2329_v51 = vadd.f32 %v751_v28, %v750_v10  ;;  %v759_v53 = vadd.f32 %v758_v38, %v611_v44  ;;  %v625_v50 = vadd.f32 1.0, %v624_v58 }
 0x1a6   :  { %v648_v56 = vadd.f32 1.0, %v2320_v34  ;;  %v635_v61 = vmul.f32 %v634_v36, %v2243_v9  ;;  %vm2333_vm6 = vcmp.lt.f32.partialorder %v636_v29, 0.0004427343  ;;  %vm2337_vm7 = vcmp.lt.f32.partialorder %v618_v59, 0.0004427343 }
 0x1a7   :  { %v1658_v0 = vpop.eup %1657  ;;  %v2343_v35 = vmul.f32 %v2224_v12, %v2224_v12  ;;  %vm2345_vm8 = vcmp.lt.f32.partialorder %v645_v37, 0.0004427343  ;;  %v627_v2 = vand.u32 2147483647, %v2281_v63  ;;  %1663 = vlog2.f32 %v666_v31 }
 0x1a8   :  { %v675_v9 = vadd.f32 1.0, %v2324_v30  ;;  %v614_v4 = vmul.f32 0.6931472, %v1656_v33  ;;  %v617_v5 = vmul.f32 %v616_v45, %v2264_v47  ;;  %v644_v10 = vmul.f32 %v643_v46, %v2272_v54 }
 0x1a9   :  { %v1660_v16 = vpop.eup %1659  ;;  %1665 = vlog2.f32 %v648_v56  ;;  %v753_v12 = vrot.slane %v2329_v51, 2  ;;  %v632_v11 = vmul.f32 0.6931472, %v1658_v0  ;;  %v626_v13 = vmul.f32 %v625_v50, %v2281_v63 }
 0x1aa   :  { %v1662_v49 = vpop.eup %1661  ;;  %v669_v18 = vmul.f32 -0.5, %v2306_v21  ;;  %v651_v3 = vmul.f32 -0.5, %v2320_v34  ;;  %v657_v41 = vadd.f32 1.0, %v2343_v35  ;;  %v2360_v15 = vmul.f32 %v2252_v39, %v2252_v39 }
 0x1ab   :  { %v623_v14 = vmul.f32 0.6931472, %v1662_v49  ;;  %vm628_vm9 = vcmp.lt.f32.partialorder %v627_v2, 0.0004427343  ;;  %1667 = vlog2.f32 %v675_v9  ;;  %v678_v47 = vmul.f32 -0.5, %v2324_v30 }
 0x1ac   :  { %v2365_v54 = vmul.f32 %v2245_v19, %v2245_v19  ;;  %v620_v63 = vsel %vm2337_vm7, %v617_v5, %v614_v4  ;;  %v641_v17 = vmul.f32 0.6931472, %v1660_v16  ;;  %1669 = vlog2.f32 %v657_v41 }
 0x1ad   :  { %v629_v20 = vsel %vm628_vm9, %v626_v13, %v623_v14  ;;  %vm801_vm10 = vcmask 1041409   ;;  %v638_v22 = vsel %vm2333_vm6, %v635_v61, %v632_v11  ;;  %v670_v23 = vadd.f32 1.0, %v669_v18 }
 0x1ae   :  { %v766_v39 = vadd.f32 %v629_v20, %v620_v63  ;;  %v654_v25 = vand.u32 2147483647, %v2320_v34  ;;  %v760_v42 = vrot.slane %v759_v53, 4  ;;  %v672_v52 = vand.u32 2147483647, %v2306_v21 }
 0x1af   :  { %v652_v6 = vadd.f32 1.0, %v651_v3  ;;  %v684_v19 = vadd.f32 1.0, %v2360_v15  ;;  %vm803_vm11 = vcmask 1042434   ;;  %v679_v27 = vadd.f32 1.0, %v678_v47 }
 0x1b0   :  { %v767_v26 = vadd.f32 %v766_v39, %v638_v22  ;;  %v660_v28 = vmul.f32 -0.5, %v2343_v35  ;;  %v702_v55 = vadd.f32 1.0, %v2365_v54  ;;  %v647_v29 = vsel %vm2345_vm8, %v644_v10, %v641_v17 }
 0x1b1   :  { %v681_v58 = vand.u32 2147483647, %v2324_v30  ;;  %v2381_v32 = vmul.f32 %v2259_v43, %v2259_v43  ;;  %v2385_v36 = vmul.f32 %v2266_v48, %v2266_v48  ;;  %v1664_v59 = vpop.eup %1663  ;;  %v671_v38 = vmul.f32 %v670_v23, %v2306_v21 }
 0x1b2   :  { %v768_v37 = vadd.f32 %v767_v26, %v647_v29  ;;  %vm2388_vm12 = vcmp.lt.f32.partialorder %v654_v25, 0.0004427343  ;;  %1671 = vlog2.f32 %v684_v19  ;;  %vm805_vm13 = vcmask 1043459  }
 0x1b3   :  { %v1666_v44 = vpop.eup %1665  ;;  %v761_v45 = vadd.f32 %v760_v42, %v759_v53  ;;  %vm2392_vm14 = vcmp.lt.f32.partialorder %v672_v52, 0.0004427343  ;;  %v653_v43 = vmul.f32 %v652_v6, %v2320_v34  ;;  %v663_v48 = vand.u32 2147483647, %v2343_v35 }
 0x1b4   :  { %v711_v33 = vadd.f32 1.0, %v2381_v32  ;;  %v769_v50 = vrot.slane %v768_v37, 4  ;;  %v661_v21 = vadd.f32 1.0, %v660_v28  ;;  %1673 = vlog2.f32 %v702_v55 }
 0x1b5   :  { %v693_v56 = vadd.f32 1.0, %v2385_v36  ;;  %vm807_vm15 = vcmask 1044484   ;;  %v680_v0 = vmul.f32 %v679_v27, %v2324_v30  ;;  %vm2401_vm1 = vcmp.lt.f32.partialorder %v681_v58, 0.0004427343  ;;  %v1668_v34 = vpop.eup %1667 }
 0x1b6   :  { %v705_v61 = vmul.f32 -0.5, %v2365_v54  ;;  %1675 = vlog2.f32 %v711_v33  ;;  %v668_v8 = vmul.f32 0.6931472, %v1664_v59  ;;  %v650_v62 = vmul.f32 0.6931472, %v1666_v44  ;;  %v1670_v2 = vpop.eup %1669 }
 0x1b7   :  { %1677 = vlog2.f32 %v693_v56  ;;  %v747_v1 = vadd.f32 %v746_v40, %v2297_v7  ;;  %vm2409_vm2 = vcmp.lt.f32.partialorder %v663_v48, 0.0004427343  ;;  %v754_v30 = vadd.f32 %v753_v12, %v2329_v51 }
 0x1b8   :  { %v762_v16 = vrot.slane %v761_v45, 2  ;;  %v770_v4 = vadd.f32 %v769_v50, %v768_v37  ;;  %vm809_vm3 = vcmask 1045509   ;;  %v659_v5 = vmul.f32 0.6931472, %v1670_v2 }
 0x1b9   :  { %v662_v10 = vmul.f32 %v661_v21, %v2343_v35  ;;  %v687_v49 = vmul.f32 -0.5, %v2360_v15  ;;  %v802_v11 = vsel %vm801_vm10, %v2247_v24, %v2198_v60  ;;  %v696_v7 = vmul.f32 -0.5, %v2385_v36 }
 0x1ba   :  { %v755_v40 = vrot.slane %v754_v30, 1  ;;  %v763_v13 = vadd.f32 %v762_v16, %v761_v45  ;;  %v771_v18 = vrot.slane %v770_v4, 2  ;;  %v656_v51 = vsel %vm2388_vm12, %v653_v43, %v650_v62 }
 0x1bb   :  { %v677_v12 = vmul.f32 0.6931472, %v1668_v34  ;;  %v665_v14 = vsel %vm2409_vm2, %v662_v10, %v659_v5  ;;  %v804_v35 = vsel %vm803_vm11, %v747_v1, %v802_v11  ;;  %v706_v41 = vadd.f32 1.0, %v705_v61 }
 0x1bc   :  { %v775_v3 = vadd.f32 %v665_v14, %v656_v51  ;;  %v756_v47 = vadd.f32 %v755_v40, %v754_v30  ;;  %v764_v63 = vrot.slane %v763_v13, 1  ;;  %v1672_v17 = vpop.eup %1671  ;;  %v674_v60 = vsel %vm2392_vm14, %v671_v38, %v668_v8  ;;  %v1592_v51 = vld [vmem:[#allocation9 + $0x8] sm:$0xff]   ;;  %v1594_v14 = vld [vmem:[#allocation9 + $0x18] sm:$0xff]  }
 0x1bd   :  { %v688_v24 = vadd.f32 1.0, %v687_v49  ;;  %v714_v20 = vmul.f32 -0.5, %v2381_v32  ;;  %v772_v22 = vadd.f32 %v771_v18, %v770_v4  ;;  %v697_v23 = vadd.f32 1.0, %v696_v7  ;;  %v1591_v18 = vld [vmem:[#allocation9] sm:$0xff]  }
 0x1be   :  { %v776_v39 = vadd.f32 %v775_v3, %v674_v60  ;;  %v765_v25 = vadd.f32 %v764_v63, %v763_v13  ;;  %v806_v42 = vsel %vm805_vm13, %v756_v47, %v804_v35  ;;  %v1674_v52 = vpop.eup %1673  ;;  %v683_v6 = vsel %vm2401_vm1, %v680_v0, %v677_v12  ;;  %v1593_v12 = vld [vmem:[#allocation9 + $0x10] sm:$0xff]   ;;  %v1595_v35 = vld [vmem:[#allocation9 + $0x20] sm:$0xff]   ;;  %v1596_v3 = vld [vmem:[#allocation9 + $0x28] sm:$0xff]  }
 0x1bf   :  { %v690_v19 = vand.u32 2147483647, %v2360_v15  ;;  %v699_v26 = vand.u32 2147483647, %v2385_v36  ;;  %v773_v27 = vrot.slane %v772_v22, 1  ;;  %v707_v38 = vmul.f32 %v706_v41, %v2365_v54  ;;  %v1599_v41 = vld [vmem:[#allocation11] sm:$0xff]  }
 0x1c0   :  { %v1676_v28 = vpop.eup %1675  ;;  %v777_v55 = vadd.f32 %v776_v39, %v683_v6  ;;  %v708_v29 = vand.u32 2147483647, %v2365_v54  ;;  %v686_v58 = vmul.f32 0.6931472, %v1672_v17  ;;  %v808_v59 = vsel %vm807_vm15, %v765_v25, %v806_v42  ;;  %1522 = vmatpush3.bf16.msra.mxu0 %v1599_v41  ;;  %v1600_v47 = vld [vmem:[#allocation11 + $0x8] sm:$0xff]   ;;  %v1597_v63 = vld [vmem:[#allocation9 + $0x30] sm:$0xff]  }
 0x1c1   :  { %v1678_v37 = vpop.eup %1677  ;;  %v689_v31 = vmul.f32 %v688_v24, %v2360_v15  ;;  %v715_v44 = vadd.f32 1.0, %v714_v20  ;;  %v774_v45 = vadd.f32 %v773_v27, %v772_v22  ;;  %v704_v46 = vmul.f32 0.6931472, %v1674_v52  ;;  %1523 = vmatprep.subr.bf16.mxu0 %v1883_v57  ;;  %v1601_v17 = vld [vmem:[#allocation11 + $0x10] sm:$0xff]   ;;  %v1598_v60 = vld [vmem:[#allocation9 + $0x38] sm:$0xff]   ;;  %v1603_v20 = vld [vmem:[#allocation11 + $0x20] sm:$0xff]  }
 0x1c2   :  { %v695_v43 = vmul.f32 0.6931472, %v1678_v37  ;;  %v698_v48 = vmul.f32 %v697_v23, %v2385_v36  ;;  %v778_v33 = vrot.slane %v777_v55, 4  ;;  %vm691_vm4 = vcmp.lt.f32.partialorder %v690_v19, 0.0004427343  ;;  %v1602_v24 = vld [vmem:[#allocation11 + $0x18] sm:$0xff]  }
 0x1c3   :  { %v717_v50 = vand.u32 2147483647, %v2381_v32  ;;  %vm700_vm5 = vcmp.lt.f32.partialorder %v699_v26, 0.0004427343  ;;  %v810_v21 = vsel %vm809_vm3, %v774_v45, %v808_v59  ;;  %v692_v56 = vsel %vm691_vm4, %v689_v31, %v686_v58  ;;  %v1604_v22 = vld [vmem:[#allocation11 + $0x28] sm:$0xff]   ;;  %v1605_v39 = vld [vmem:[#allocation11 + $0x30] sm:$0xff]  }
 0x1c4   :  { %v713_v0 = vmul.f32 0.6931472, %v1676_v28  ;;  %v701_v53 = vsel %vm700_vm5, %v698_v48, %v695_v43  ;;  %v779_v61 = vadd.f32 %v778_v33, %v777_v55  ;;  %vm709_vm6 = vcmp.lt.f32.partialorder %v708_v29, 0.0004427343  ;;  %1524 = vmatpush3.bf16.msra.mxu0 %v1600_v47  ;;  %v1606_v23 = vld [vmem:[#allocation11 + $0x38] sm:$0xff]  }
 0x1c5   :  { %v784_v54 = vadd.f32 %v701_v53, %v692_v56  ;;  %v710_v15 = vsel %vm709_vm6, %v707_v38, %v704_v46  ;;  %v716_v34 = vmul.f32 %v715_v44, %v2381_v32  ;;  %vm718_vm7 = vcmp.lt.f32.partialorder %v717_v50, 0.0004427343  ;;  %1525 = vmatprep.subr.bf16.mxu0 %v1883_v57  ;;  %v1337_v25 = vld [vmem:[%s2506_s3] ss:$0 sm:$0xff]  ;;  %v1609_v53 = vld [vmem:[#allocation12 + $0x10] sm:$0xff]  }
 0x1c6   :  { %v780_v8 = vrot.slane %v779_v61, 2  ;;  %vm811_vm8 = vcmask 1046534   ;;  %vm813_vm9 = vcmask 1047559   ;;  %v1346_v45 = vld [vmem:[%s2508_s5] ss:$0 sm:$0xff] }
 0x1c7   :  { %v785_v62 = vadd.f32 %v784_v54, %v710_v15  ;;  %v719_v36 = vsel %vm718_vm7, %v716_v34, %v713_v0  ;;  %v1607_v56 = vld [vmem:[#allocation12] sm:$0xff]   ;;  %v1608_v0 = vld [vmem:[#allocation12 + $0x8] sm:$0xff]   ;;  %v1613_v34 = vld [vmem:[#allocation12 + $0x30] sm:$0xff]  }
 0x1c8   :  { %v781_v1 = vadd.f32 %v780_v8, %v779_v61  ;;  %1526 = vmatpush3.bf16.msra.mxu0 %v1601_v17  ;;  %v1610_v61 = vld [vmem:[#allocation12 + $0x18] sm:$0xff]   ;;  %v1611_v54 = vld [vmem:[#allocation12 + $0x20] sm:$0xff]   ;;  %v1612_v15 = vld [vmem:[#allocation12 + $0x28] sm:$0xff]  }
 0x1c9   :  { %v786_v2 = vadd.f32 %v785_v62, %v719_v36  ;;  %1527 = vmatprep.subr.bf16.mxu0 %v1883_v57  ;;  %v1614_v8 = vld [vmem:[#allocation12 + $0x38] sm:$0xff]   ;;  %v1355_v62 = vld [vmem:[%s2510_s7] ss:$0 sm:$0xff]  ;;  %s1885_s7 = smov [#allocation15]  }
 0x1ca   :  { %v782_v9 = vrot.slane %v781_v1, 1  ;;  %s1313_s13 = sshll.u32 %s1885_s7, 4  ;;  %s1314_s13 = int_to_ptr.vmem [resolvable:$true] %s1313_s13 }
 0x1cb   :  { %v787_v30 = vrot.slane %v786_v2, 4  ;;  %s1817_s19 = scalar_lea.vmem %s1314_s13, 128  ;;  %p1822_p7 = scmp.lt.s32.totalorder %s1314_s13, %s1314_s13 }
 0x1cc   :  { %v783_v16 = vadd.f32 %v782_v9, %v781_v1  ;;  %1528 = vmatpush3.bf16.msra.mxu0 %v1602_v24  ;;  %p1818_p6 = scmp.ne.s32.totalorder %s1314_s13, %s1817_s19  ;;  %p1823_p8 = scmp.lt.s32.totalorder %s1817_s19, %s1817_s19 }
 0x1cd   :  { %v788_v4 = vadd.f32 %v787_v30, %v786_v2  ;;  %1529 = vmatprep.subr.bf16.mxu0 %v1883_v57 }
 0x1ce   :  { %v812_v5 = vsel %vm811_vm8, %v783_v16, %v810_v21  ;;  %p1824_p9 = por %p1823_p8, %p1822_p7 }
 0x1cf   :  { %v789_v10 = vrot.slane %v788_v4, 2 }
 0x1d0   :  { %1530 = vmatpush3.bf16.msra.mxu0 %v1603_v20  ;;  %p1825_p10 = pnand %p1824_p9, %p1818_p6 }
 0x1d1   :  { %v790_v49 = vadd.f32 %v789_v10, %v788_v4  ;;  %1531 = vmatprep.subr.bf16.mxu0 %v1883_v57 }
 0x1d3   :  { %v791_v11 = vrot.slane %v790_v49, 1 }
 0x1d4   :  { %1532 = vmatpush3.bf16.msra.mxu0 %v1604_v22 }
 0x1d5   :  { %v792_v7 = vadd.f32 %v791_v11, %v790_v49  ;;  %1533 = vmatprep.subr.bf16.mxu0 %v1883_v57 }
 0x1d7   :  { %v814_v40 = vsel %vm813_vm9, %v792_v7, %v812_v5 }
 0x1d8   :  { %v822_v13 = vmul.f32 0.03125, %v814_v40  ;;  %1534 = vmatpush3.bf16.msra.mxu0 %v1605_v39 }
 0x1d9   :  { %1535 = vmatprep.subr.bf16.mxu0 %v1883_v57 }
 0x1da   :  { %v823_v32 = vpack.c.bf16 %v822_v13, %v822_v13 }
 0x1dc   :  { %1498 = vmatmul.mubr.bf16.vlgmr.msra.gmra.mrb[0].mxu1 %v823_v32  ;;  %1536 = vmatpush3.bf16.msra.mxu0 %v1606_v23  ;;  %v1364_v32 = vld [vmem:[%s2512_s9] ss:$0 sm:$0xff] }
 0x1dd   :  { %1517 = vmatprep.mubr.msk.bf16.mxu1 %vm1884_vm0, %v1883_v57  ;;  %1502 = vmatpush3.bf16.msra.mxu1 %v1591_v18 }
 0x1de   :  { %1503 = vmatprep.subr.bf16.mxu1 %v1883_v57 }
 0x1e1   :  { %1504 = vmatpush3.bf16.msra.mxu1 %v1592_v51 }
 0x1e2   :  { %1505 = vmatprep.subr.bf16.mxu1 %v1883_v57 }
 0x1e5   :  { %1506 = vmatpush3.bf16.msra.mxu1 %v1593_v12 }
 0x1e6   :  { %1507 = vmatprep.subr.bf16.mxu1 %v1883_v57 }
 0x1e9   :  { %1508 = vmatpush3.bf16.msra.mxu1 %v1594_v14 }
 0x1ea   :  { %1509 = vmatprep.subr.bf16.mxu1 %v1883_v57 }
 0x1ed   :  { %1510 = vmatpush3.bf16.msra.mxu1 %v1595_v35 }
 0x1ee   :  { %1511 = vmatprep.subr.bf16.mxu1 %v1883_v57 }
 0x1f1   :  { %1512 = vmatpush3.bf16.msra.mxu1 %v1596_v3 }
 0x1f2   :  { %1513 = vmatprep.subr.bf16.mxu1 %v1883_v57 }
 0x1f5   :  { %1514 = vmatpush3.bf16.msra.mxu1 %v1597_v63 }
 0x1f6   :  { %1515 = vmatprep.subr.bf16.mxu1 %v1883_v57 }
 0x1f9   :  { %1516 = vmatpush3.bf16.msra.mxu1 %v1598_v60 }
 0x1fa   :  { %1541 = vmatprep.subr.bf16.mxu1 %v1883_v57 }
 0x2af   :  { %v929_v42 = vpop.f32.mrb[0].mxu1 }
 0x2b0   :  { %v930_v52 = vadd.f32 %v1337_v25, %v929_v42  ;;  %v1499_v6 = vpop.f32.mrb[1].mxu1 }
 0x2b1   :  { %v932_v19 = vpop.f32.mrb[2].mxu1 }
 0x2b2   :  { %v935_v26 = vmul.f32 %v930_v52, %v930_v52  ;;  %v1500_v27 = vpop.f32.mrb[3].mxu1 }
 0x2b4   :  { %v936_v28 = vmul.f32 %v935_v26, %v930_v52 }
 0x2b6   :  { %v937_v55 = vmul.f32 0.044715, %v936_v28 }
 0x2b8   :  { %v938_v29 = vadd.f32 %v937_v55, %v930_v52 }
 0x2ba   :  { %v939_v58 = vmul.f32 0.7978846, %v938_v29 }
 0x2bc   :  { %1679 = vtanh.f32 %v939_v58 }
 0x2c6   :  { %v1680_v59 = vpop.eup %1679 }
 0x2c7   :  { %v941_v37 = vadd.f32 1.0, %v1680_v59 }
 0x2c9   :  { %v942_v38 = vmul.f32 0.5, %v941_v37 }
 0x2cb   :  { %v943_v31 = vmul.f32 %v942_v38, %v930_v52 }
 0x2cd   :  { %v944_v44 = vpack.c.bf16 %v943_v31, %v943_v31 }
 0x2cf   :  { %1518 = vmatmul.mubr.bf16.vlgmr.msra.gmra.mrb[4].mxu1 %v944_v44 }
 0x2d0   :  { %1557 = vmatprep.mubr.msk.bf16.mxu1 %vm1884_vm0, %v1883_v57  ;;  %1542 = vmatpush3.bf16.msra.mxu1 %v1607_v56 }
 0x2d1   :  { %1543 = vmatprep.subr.bf16.mxu1 %v1883_v57 }
 0x2d4   :  { %1544 = vmatpush3.bf16.msra.mxu1 %v1608_v0 }
 0x2d5   :  { %1545 = vmatprep.subr.bf16.mxu1 %v1883_v57 }
 0x2d8   :  { %1546 = vmatpush3.bf16.msra.mxu1 %v1609_v53 }
 0x2d9   :  { %1547 = vmatprep.subr.bf16.mxu1 %v1883_v57 }
 0x2dc   :  { %1548 = vmatpush3.bf16.msra.mxu1 %v1610_v61 }
 0x2dd   :  { %1549 = vmatprep.subr.bf16.mxu1 %v1883_v57 }
 0x2e0   :  { %1550 = vmatpush3.bf16.msra.mxu1 %v1611_v54 }
 0x2e1   :  { %1551 = vmatprep.subr.bf16.mxu1 %v1883_v57 }
 0x2e4   :  { %1552 = vmatpush3.bf16.msra.mxu1 %v1612_v15 }
 0x2e5   :  { %1553 = vmatprep.subr.bf16.mxu1 %v1883_v57 }
 0x2e8   :  { %1554 = vmatpush3.bf16.msra.mxu1 %v1613_v34 }
 0x2e9   :  { %1555 = vmatprep.subr.bf16.mxu1 %v1883_v57 }
 0x2ec   :  { %1556 = vmatpush3.bf16.msra.mxu1 %v1614_v8 }
 0x3a2   :  { %v1050_v46 = vpop.f32.mrb[4].mxu1 }
 0x3a3   :  { %v1051_v43 = vadd.f32 %v1346_v45, %v1050_v46  ;;  %v1519_v48 = vpop.f32.mrb[5].mxu1 }
 0x3a4   :  { %v1053_v33 = vpop.f32.mrb[6].mxu1 }
 0x3a5   :  { %v1057_v50 = vpack.c.bf16 %v1051_v43, %v1051_v43  ;;  %1056 = vst [vmem:[#allocation15] sm:$0xff] %v1051_v43  ;;  %v1520_v21 = vpop.f32.mrb[7].mxu1 }
 0x3a7   :  { %1538 = vmatmul.mubr.bf16.vlgmr.msra.gmra.mrb[32].mxu0 %v1057_v50 }
 0x47a   :  { %v1163_v36 = vpop.f32.mrb[32].mxu0 }
 0x47b   :  { %v1164_v1 = vadd.f32 %v1355_v62, %v1163_v36  ;;  %v1539_v2 = vpop.f32.mrb[33].mxu0 }
 0x47c   :  { %v1166_v9 = vpop.f32.mrb[34].mxu0 }
 0x47d   :  { %v1169_v30 = vmul.f32 %v1164_v1, %v1164_v1  ;;  %v1540_v16 = vpop.f32.mrb[35].mxu0 }
 0x47f   :  { %v1170_v4 = vmul.f32 %v1169_v30, %v1164_v1 }
 0x481   :  { %v1171_v5 = vmul.f32 0.044715, %v1170_v4 }
 0x483   :  { %v1172_v10 = vadd.f32 %v1171_v5, %v1164_v1 }
 0x485   :  { %v1173_v49 = vmul.f32 0.7978846, %v1172_v10 }
 0x487   :  { %1681 = vtanh.f32 %v1173_v49 }
 0x491   :  { %v1682_v11 = vpop.eup %1681 }
 0x492   :  { %v1175_v7 = vadd.f32 1.0, %v1682_v11 }
 0x494   :  { %v1176_v40 = vmul.f32 0.5, %v1175_v7 }
 0x496   :  { %v1177_v57 = vmul.f32 %v1176_v40, %v1164_v1 }
 0x498   :  { %v1178_v13 = vpack.c.bf16 %v1177_v57, %v1177_v57 }
 0x49a   :  { %1558 = vmatmul.mubr.bf16.vlgmr.msra.gmra.mrb[8].mxu1 %v1178_v13 }
 0x56d   :  { %v1284_v18 = vpop.f32.mrb[8].mxu1 }
 0x56e   :  { %v1285_v51 = vadd.f32 %v1364_v32, %v1284_v18  ;;  %v1559_v12 = vpop.f32.mrb[9].mxu1 }
 0x56f   :  { %v1287_v14 = vpop.f32.mrb[10].mxu1 }
 0x570   :  { %v1560_v35 = vpop.f32.mrb[11].mxu1  ;;  %v1290_v3 = vmul.f32 %v1285_v51, %v1285_v51 }
 0x572   :  { %1291 = vadd.xlane.f32.xlu0 %v1290_v3 }
 0x573   :  { %1828 = shalt.err (!%p1825_p10)
}
 0x574   :  { %s1829_s9 = scalar_lea.hbm %s2514_s11, 128 }
 0x575   :  { %p1830_p11 = scmp.ne.s32.totalorder %s2514_s11, %s1829_s9  ;;  %p1833_p12 = scmp.lt.u32.totalorder %s1829_s9, %s2514_s11 }
 0x577   :  { %p1835_p13 = pnand %p1833_p12, %p1830_p11 }
 0x579   :  { %1838 = shalt.err (!%p1835_p13)
}
 0x57a   :  { %1316 = dma.vmem_to_hbm [thread:$0]  %s1314_s13, 128, %s2514_s11, [#allocation16]  }
 0x57b   :  { %s1886_s26 = smov [#allocation14]  }
 0x57c   :  { %s1303_s29 = sshll.u32 %s1886_s26, 4  ;;  %s1304_s29 = int_to_ptr.vmem [resolvable:$true] %s1303_s29 }
 0x57d   :  { %s1839_s30 = scalar_lea.vmem %s1304_s29, 128  ;;  %p1844_p1 = scmp.lt.s32.totalorder %s1304_s29, %s1304_s29 }
 0x57e   :  { %p1840_p0 = scmp.ne.s32.totalorder %s1304_s29, %s1839_s30  ;;  %p1845_p2 = scmp.lt.s32.totalorder %s1839_s30, %s1839_s30 }
 0x580   :  { %p1846_p3 = por %p1845_p2, %p1844_p1 }
 0x582   :  { %p1847_p4 = pnand %p1846_p3, %p1840_p0 }
 0x5ff   :  { %v1292_v41 = vpop.xlane.xlu0 %1291 }
 0x600   :  { %v1293_v47 = vmax.f32 %v1292_v41, 1e-24 }
 0x602   :  { %1683 = vrsqrt.f32 %v1293_v47 }
 0x60c   :  { %v1684_v63 = vpop.eup %1683 }
 0x60d   :  { %v1295_v17 = vmul.f32 %v1684_v63, %v1285_v51 }
 0x60f   :  { %1296 = vst [vmem:[#allocation14] sm:$0xff] %v1295_v17 }
 0x610   :  { %1850 = shalt.err (!%p1847_p4)
}
 0x611   :  { %s1851_s11 = scalar_lea.hbm %s2513_s10, 128 }
 0x612   :  { %p1852_p5 = scmp.ne.s32.totalorder %s2513_s10, %s1851_s11  ;;  %p1855_p6 = scmp.lt.u32.totalorder %s1851_s11, %s2513_s10 }
 0x614   :  { %p1857_p7 = pnand %p1855_p6, %p1852_p5 }
 0x616   :  { %1860 = shalt.err (!%p1857_p7)
}
 0x617   :  { %1306 = dma.vmem_to_hbm [thread:$0]  %s1304_s29, 128, %s2513_s10, [#allocation5]  }
 0x618   :  { %1869 = dma.done.wait [#allocation5], 128  }
 0x619   :  { %1870 = vsyncadd [#allocation5], 4294967168 }
 0x61a   :  { %1871 = dma.done.wait [#allocation16], 128  }
 0x61b   :  { %1872 = vsyncadd [#allocation16], 4294967168 }
 0x61c   :  { %1323 = vsyncpa [#allocation4], 1 }
 0x61d   :  { %1324 = vsyncpa [#allocation7], 1 }
 0x61e   :  { %1325 = vsyncpa [#allocation10], 1 }
 0x61f   :  { %1326 = vsyncpa [#allocation13], 1 }
 0x620   :  { %1327 = vsyncpa [#allocation5], 1 }
 0x621   :  { %1328 = vsyncpa [#allocation16], 1 }

</bundles_post_ra>
